<compile_context>
chip_gen: v6e
topology: v6e:2x2x1
jax: 0.10.0
libtpu: 0.0.40
codegen_flags: <defaults>
</compile_context>

<pallas_src>
import jax
import jax.numpy as jnp
from jax.experimental import pallas as pl
from jax.experimental.pallas import tpu as pltpu

IGNORE_INDEX = 255
N_STATS = 5            # ce, sum_p, sum_t, nom, n_valid
N_CORE_SPLIT = 2       # voxel-axis split so v7x's 2 TensorCores both get work


def _select_tiling():
    """Per-generation voxel tile size (lanes) and scoped VMEM budget."""
    try:
        kind = jax.devices()[0].device_kind.lower()
    except Exception:  # pragma: no cover - defensive; default backend is TPU.
        kind = ""
    if "v5" in kind or "v6" in kind:
        # 128 MiB VMEM parts: big tiles amortize the ~0.35 us per-step overhead.
        return 32768, 64 * 1024 * 1024
    # v7x has 64 MiB VMEM per TensorCore; stay conservative there / on unknowns.
    return 16384, 48 * 1024 * 1024


def _occ_loss_kernel(logits_ref, tgt_ref, err_ref, cls_ref):
    """Class-major tile: logits (C, TS) any float dtype, targets (1, TS) int32.

    cls_ref (C, N_STATS), resident across the innermost (arbitrary) grid axis:
      0: ce[c]    = sum_s valid * 1[t==c] * (-log p[c])
      1: sum_p[c] = sum_s valid * p[c]
      2: sum_t[c] = sum_s valid * 1[t==c]
      3: nom[c]   = sum_s valid * p[c] * 1[t==c]
      4: n_valid  = sum_s valid          (same value replicated on every row)
    """
    @pl.when(pl.program_id(2) == 0)
    def _():
        cls_ref[...] = jnp.zeros_like(cls_ref)

    logits = logits_ref[...].astype(jnp.float32)            # (C, TS) f32 math
    tgt = tgt_ref[...]                                       # (1, TS) int32
    c_dim, ts = logits.shape

    valid = (tgt != IGNORE_INDEX).astype(jnp.float32)        # (1, TS)
    cls_iota = jax.lax.broadcasted_iota(jnp.int32, (c_dim, ts), 0)
    onehot = (cls_iota == tgt).astype(jnp.float32)           # (C, TS)

    # softmax / log-softmax along the class (sublane) axis.
    m = jnp.max(logits, axis=0, keepdims=True)               # (1, TS)
    shifted = logits - m
    ex = jnp.exp(shifted)
    denom = jnp.sum(ex, axis=0, keepdims=True)                # (1, TS)
    # Exact reciprocal: denom is only (1, TS), so the cost is negligible and it
    # keeps p (and everything downstream) in parity with the torch reference.
    p = ex * pl.reciprocal(denom, approx=False)
    neg_logp = jnp.log(denom) - shifted                       # exact -log p

    vo = onehot * valid                                       # ignore-masked one-hot
    p_valid = p * valid

    # Lovasz input: |fg - pred| with ignored/padded voxels forced to zero error.
    # fg itself is reconstructed from the targets in plain JAX (no HBM stream).
    err_ref[...] = jnp.abs(vo - p_valid).astype(err_ref.dtype)

    ce_c = jnp.sum(vo * neg_logp, axis=1, keepdims=True)      # (C, 1) lane reduce
    sum_p = jnp.sum(p_valid, axis=1, keepdims=True)
    sum_t = jnp.sum(vo, axis=1, keepdims=True)
    nom = jnp.sum(p_valid * onehot, axis=1, keepdims=True)
    nv = jnp.broadcast_to(jnp.sum(valid, axis=1, keepdims=True), (c_dim, 1))

    # Single accumulator update (one RMW on cls_ref instead of five narrow
    # masked slice stores).  Built with elementwise selects only.
    lane = jax.lax.broadcasted_iota(jnp.int32, (c_dim, N_STATS), 1)
    upd = jnp.where(lane == 0, ce_c, 0.0)
    upd = jnp.where(lane == 1, sum_p, upd)
    upd = jnp.where(lane == 2, sum_t, upd)
    upd = jnp.where(lane == 3, nom, upd)
    upd = jnp.where(lane == 4, nv, upd)
    cls_ref[...] = cls_ref[...] + upd


def occ_voxel_stats(logits_bcs, targets_b1s):
    """Runs the Pallas kernel over all voxels in class-major layout.

    logits_bcs:  (B, C, S) float (bf16 passes straight through — no up-cast).
    targets_b1s: (B, 1, S) int32.
    Returns:
      err (C, B*S_pad) bf16,
      cls (N_CORE_SPLIT, B, C, N_STATS) f32,
      targets_flat (B*S_pad,) int32 (IGNORE_INDEX-padded, column-aligned with err).
    """
    b, c, s = logits_bcs.shape
    max_tile, vmem_bytes = _select_tiling()
    # Aim for an even number of voxel tiles so the leading core-split grid axis
    # does not force an extra all-padding tile for small inputs.
    tile_s = min(max_tile, pl.cdiv(pl.cdiv(s, N_CORE_SPLIT), 128) * 128)
    s_pad = pl.cdiv(s, N_CORE_SPLIT * tile_s) * (N_CORE_SPLIT * tile_s)
    if s_pad != s:
        logits_bcs = jnp.pad(logits_bcs, ((0, 0), (0, 0), (0, s_pad - s)))
        targets_b1s = jnp.pad(targets_b1s, ((0, 0), (0, 0), (0, s_pad - s)),
                              constant_values=IGNORE_INDEX)
    n_s = s_pad // tile_s                 # even by construction
    n_s_half = n_s // N_CORE_SPLIT

    err, cls = pl.pallas_call(
        _occ_loss_kernel,
        out_shape=(jax.ShapeDtypeStruct((c, b * s_pad), jnp.bfloat16),
                   jax.ShapeDtypeStruct((N_CORE_SPLIT, b, c, N_STATS),
                                        jnp.float32)),
        grid_spec=pltpu.PrefetchScalarGridSpec(
            num_scalar_prefetch=0,
            grid=(N_CORE_SPLIT, b, n_s_half),
            in_specs=[
                pl.BlockSpec((None, c, tile_s),
                             lambda ci, bi, si: (bi, 0, ci * n_s_half + si)),
                pl.BlockSpec((None, 1, tile_s),
                             lambda ci, bi, si: (bi, 0, ci * n_s_half + si)),
            ],
            out_specs=[
                pl.BlockSpec((c, tile_s),
                             lambda ci, bi, si:
                             (0, bi * n_s + ci * n_s_half + si)),
                pl.BlockSpec((None, None, c, N_STATS),
                             lambda ci, bi, si: (ci, bi, 0, 0)),
            ]),
        compiler_params=pltpu.CompilerParams(
            dimension_semantics=("parallel", "parallel", "arbitrary"),
            vmem_limit_bytes=vmem_bytes),
    )(logits_bcs, targets_b1s)

    targets_flat = targets_b1s.reshape(b * s_pad)
    return err, cls, targets_flat


def _bce_with_ones(x):
    # F.binary_cross_entropy(x, ones_like(x)) == -log(x)
    return -jnp.log(jnp.clip(x, 1e-30, 1.0))


def _lovasz_from_errors(errors, targets_flat, present):
    """Lovasz-softmax over 'present' classes.

    errors:       (C, N) bf16 — |fg - p_c|, zero at ignored/padded voxels.
    targets_flat: (N,) int32  — IGNORE_INDEX at ignored/padded voxels.
    present:      (C,) bool   — classes with at least one valid fg voxel.

    Ignored / padded voxels carry error == 0 and fg == 0, which is exactly
    equivalent to filtering them out: zero-error coordinates contribute nothing
    to the Lovasz extension and it is tie-invariant.
    """
    # TODO(synk): the global per-class descending sort + cumsum stays in plain
    # JAX (no Pallas sort); it dominates end-to-end time on full voxel grids.
    def per_class(err_c, cls_idx, pres_c):
        err_c = err_c.astype(jnp.float32)
        order = jnp.argsort(-err_c)
        err_s = err_c[order]
        # fg reconstructed from the targets (no fg stream from the kernel).
        fg_s = (targets_flat[order] == cls_idx).astype(jnp.float32)
        gts = jnp.sum(fg_s)
        inter = gts - jnp.cumsum(fg_s)
        union = gts + jnp.cumsum(1.0 - fg_s)
        jac = 1.0 - inter / union
        grad = jnp.concatenate([jac[:1], jac[1:] - jac[:-1]])
        return jnp.where(pres_c, jnp.dot(err_s, grad), 0.0)

    c = errors.shape[0]
    cls_ids = jnp.arange(c, dtype=targets_flat.dtype)
    losses = jax.vmap(per_class, in_axes=(0, 0, 0))(errors, cls_ids, present)
    n_present = jnp.sum(present.astype(jnp.float32))
    return jnp.sum(losses) / jnp.maximum(n_present, 1.0)


class OccLossPallas:
    """JAX/Pallas re-implementation of OccLoss (non-dual, cascade_ratio == 1)."""

    def __init__(self, balance_cls_weight=True, loss_weight_cfg=None,
                 cascade_ratio=1, sample_from_voxel=False, sample_from_img=False,
                 dual=False, dataset_flag=1, num_cls=17, empty_idx=0,
                 class_frequencies=None):
        assert not dual  # TODO(synk): dual-dataset branch not implemented.
        if balance_cls_weight and class_frequencies is not None:
            self.class_weights = 1.0 / jnp.log(
                class_frequencies.astype(jnp.float32) + 0.001)
        else:
            self.class_weights = jnp.ones((num_cls,), jnp.float32) / num_cls
        self.empty_idx = empty_idx
        self.cascade_ratio = cascade_ratio
        self.sample_from_voxel = sample_from_voxel
        self.sample_from_img = sample_from_img
        if loss_weight_cfg is None:
            loss_weight_cfg = {'loss_voxel_ce_weight': 1.0,
                               'loss_voxel_sem_scal_weight': 1.0,
                               'loss_voxel_geo_scal_weight': 1.0,
                               'loss_voxel_lovasz_weight': 1.0}
        self.loss_voxel_ce_weight = loss_weight_cfg.get('loss_voxel_ce_weight', 1.0)
        self.loss_voxel_sem_scal_weight = loss_weight_cfg.get(
            'loss_voxel_sem_scal_weight', 1.0)
        self.loss_voxel_geo_scal_weight = loss_weight_cfg.get(
            'loss_voxel_geo_scal_weight', 1.0)
        self.loss_voxel_lovasz_weight = loss_weight_cfg.get(
            'loss_voxel_lovasz_weight', 1.0)

    def loss_voxel(self, output_voxels, target_voxels, tag, flag=None):
        b, c, h, w, d = output_voxels.shape
        # TODO(synk): the torch.mode based ratio!=1 target downsampling path is
        # not implemented; targets must already match the output resolution.
        assert target_voxels.shape == (b, h, w, d)

        s = h * w * d
        # Class-major layout feeds the kernel directly: reshape only, no
        # transpose, no dtype up-cast (bf16 model outputs stay bf16 in HBM).
        logits_bcs = output_voxels.reshape(b, c, s)
        targets_b1s = target_voxels.reshape(b, 1, s).astype(jnp.int32)

        err, cls, targets_flat = occ_voxel_stats(logits_bcs, targets_b1s)
        agg = jnp.sum(cls, axis=(0, 1))                # (C, N_STATS)
        ce_c = agg[:, 0]
        sum_p = agg[:, 1]
        sum_t = agg[:, 2]
        nom = agg[:, 3]
        n_valid = agg[0, 4]                            # replicated per row
        # Derived algebraically (never computed / stored by the kernel):
        #   spec_n[c] = sum_n valid * (1 - p[c]) * (1 - 1[t==c])
        spec_n = n_valid - sum_p - sum_t + nom
        cw = self.class_weights.astype(jnp.float32)

        # --- CE_ssc_loss: weighted cross entropy, ignore_index=255, mean -----
        loss_ce = (jnp.sum(cw * ce_c)
                   / jnp.maximum(jnp.sum(cw * sum_t), 1e-12))

        # --- sem_scal_loss ----------------------------------------------------
        present = sum_t > 0
        precision = nom / jnp.maximum(sum_p, 1e-12)
        recall = nom / jnp.maximum(sum_t, 1e-12)
        spec_den = n_valid - sum_t
        specificity = spec_n / jnp.maximum(spec_den, 1e-12)
        per_class = (jnp.where(sum_p > 0, _bce_with_ones(precision), 0.0)
                     + _bce_with_ones(recall)
                     + jnp.where(spec_den > 0, _bce_with_ones(specificity), 0.0))
        loss_sem = (jnp.sum(jnp.where(present, per_class, 0.0))
                    / jnp.maximum(jnp.sum(present.astype(jnp.float32)), 1.0))

        # --- geo_scal_loss (derived from per-class sums at empty_idx) ---------
        e = self.empty_idx
        inter = spec_n[e]                 # sum valid*(1-1[t==e])*(1-p_e)
        geo_prec = inter / jnp.maximum(n_valid - sum_p[e], 1e-12)
        geo_rec = inter / jnp.maximum(n_valid - sum_t[e], 1e-12)
        geo_spec = nom[e] / jnp.maximum(sum_t[e], 1e-12)
        loss_geo = (_bce_with_ones(geo_prec) + _bce_with_ones(geo_rec)
                    + _bce_with_ones(geo_spec))

        # --- lovasz_softmax (fg reconstructed from targets, no kernel stream) -
        loss_lovasz = _lovasz_from_errors(err, targets_flat, present)

        return {
            'loss_voxel_ce_{}'.format(tag): self.loss_voxel_ce_weight * loss_ce,
            'loss_voxel_sem_scal_{}'.format(tag):
                self.loss_voxel_sem_scal_weight * loss_sem,
            'loss_voxel_geo_scal_{}'.format(tag):
                self.loss_voxel_geo_scal_weight * loss_geo,
            'loss_voxel_lovasz_{}'.format(tag):
                self.loss_voxel_lovasz_weight * loss_lovasz,
        }

    def forward(self, output=None, target_voxels=None, target_points=None,
                dataset_flag=None, img_metas=None, visible_mask=None, **kwargs):
        flag = dataset_flag[0] if dataset_flag is not None else 1
        loss_dict = {}
        for index, output_voxel in enumerate(output['output_voxels']):
            loss_dict.update(self.loss_voxel(output_voxel, target_voxels,
                                             tag='c_{}'.format(index), flag=flag))
        # TODO(synk): cascade_ratio != 1 fine-point losses (loss_point) not implemented.
        return loss_dict


if __name__ == "__main__":
    key = jax.random.PRNGKey(0)
    B, C, H, W, D = 2, 17, 16, 16, 8
    k1, k2, k3 = jax.random.split(key, 3)

    # bf16 logits: halves the dominant HBM read stream; math stays f32 in-kernel.
    logits = jax.random.normal(k1, (B, C, H, W, D),
                               dtype=jnp.float32).astype(jnp.bfloat16)
    targets = jax.random.randint(k2, (B, H, W, D), 0, C).astype(jnp.int32)
    ignore = jax.random.uniform(k3, (B, H, W, D)) < 0.05
    targets = jnp.where(ignore, jnp.int32(IGNORE_INDEX), targets)

    # Deterministic synthetic class frequencies (stand-in for the
    # nusc_class_frequencies table); class_weights = 1 / log(freq + 0.001).
    class_freq = jnp.asarray([1.0e5 * (i + 1) for i in range(C)],
                             dtype=jnp.float32)

    loss_mod = OccLossPallas(balance_cls_weight=True, num_cls=C, empty_idx=0,
                             class_frequencies=class_freq)

    output = {'output_voxels': [logits],
              'output_coords_fine': None,
              'output_voxels_fine': None}

    losses = loss_mod.forward(output=output, target_voxels=targets,
                              dataset_flag=[1])
    jax.block_until_ready(losses)
    print("KERNEL_OK")
</pallas_src>

<mosaic_0001>
module attributes {stable_mosaic.version = 11 : i64} {
  func.func @_occ_loss_kernel(%arg0: i32, %arg1: i32, %arg2: i32, %arg3: memref<1x17x1024xbf16, #tpu.memory_space<vmem>>, %arg4: memref<1x1x1024xi32, #tpu.memory_space<vmem>>, %arg5: memref<17x1024xbf16, #tpu.memory_space<vmem>>, %arg6: memref<1x1x17x5xf32, #tpu.memory_space<vmem>>) attributes {dimension_semantics = [#tpu.dimension_semantics<parallel>, #tpu.dimension_semantics<parallel>, #tpu.dimension_semantics<arbitrary>], iteration_bounds = array<i64: 2, 2, 1>, scalar_prefetch = 0 : i64, scratch_operands = 0 : i64, tpu.core_type = #tpu.core_type<tc>, window_params = [{transform_indices = @transform_0, window_bounds = array<i64: 1, 17, 1024>}, {transform_indices = @transform_1, window_bounds = array<i64: 1, 1, 1024>}, {transform_indices = @transform_2, window_bounds = array<i64: 17, 1024>}, {transform_indices = @transform_3, window_bounds = array<i64: 1, 1, 17, 5>}]} {
    %c0_i32 = arith.constant 0 : i32
    %0 = arith.cmpi eq, %arg2, %c0_i32 : i32
    %1 = arith.extui %0 : i1 to i32
    %c0_i32_0 = arith.constant 0 : i32
    %2 = arith.cmpi ne, %1, %c0_i32_0 : i32
    scf.if %2 {
      %cst_24 = arith.constant 0.000000e+00 : f32
      %85 = vector.broadcast %cst_24 : f32 to vector<17x5xf32>
      %c0_25 = arith.constant 0 : index
      %c0_26 = arith.constant 0 : index
      %c0_27 = arith.constant 0 : index
      %c0_28 = arith.constant 0 : index
      %86 = vector.load %arg6[%c0_25, %c0_26, %c0_27, %c0_28] : memref<1x1x17x5xf32, #tpu.memory_space<vmem>>, vector<1x1x17x5xf32>
      %87 = vector.shape_cast %86 : vector<1x1x17x5xf32> to vector<17x5xf32>
      %88 = vector.shape_cast %85 : vector<17x5xf32> to vector<1x1x17x5xf32>
      tpu.vector_store %arg6[%c0_25, %c0_26, %c0_27, %c0_28], %88 {strides = array<i32>} : memref<1x1x17x5xf32, #tpu.memory_space<vmem>>, vector<1x1x17x5xf32>,
    } else {
    }
    %c0 = arith.constant 0 : index
    %c0_1 = arith.constant 0 : index
    %c0_2 = arith.constant 0 : index
    %3 = vector.load %arg3[%c0, %c0_1, %c0_2] : memref<1x17x1024xbf16, #tpu.memory_space<vmem>>, vector<1x17x1024xbf16>
    %4 = vector.shape_cast %3 : vector<1x17x1024xbf16> to vector<17x1024xbf16>
    %5 = arith.extf %4 : vector<17x1024xbf16> to vector<17x1024xf32>
    %c0_3 = arith.constant 0 : index
    %c0_4 = arith.constant 0 : index
    %c0_5 = arith.constant 0 : index
    %6 = vector.load %arg4[%c0_3, %c0_4, %c0_5] : memref<1x1x1024xi32, #tpu.memory_space<vmem>>, vector<1x1x1024xi32>
    %7 = vector.shape_cast %6 : vector<1x1x1024xi32> to vector<1x1024xi32>
    %c255_i32 = arith.constant 255 : i32
    %8 = vector.broadcast %c255_i32 : i32 to vector<1x1024xi32>
    %9 = arith.cmpi ne, %7, %8 : vector<1x1024xi32>
    %10 = arith.extui %9 : vector<1x1024xi1> to vector<1x1024xi32>
    %11 = arith.sitofp %10 : vector<1x1024xi32> to vector<1x1024xf32>
    %12 = tpu.iota {dimensions = array<i32: 0>} : vector<17x1024xi32>
    %13 = vector.broadcast %7 : vector<1x1024xi32> to vector<17x1024xi32>
    %14 = arith.cmpi eq, %12, %13 : vector<17x1024xi32>
    %15 = arith.extui %14 : vector<17x1024xi1> to vector<17x1024xi32>
    %16 = arith.sitofp %15 : vector<17x1024xi32> to vector<17x1024xf32>
    %cst = arith.constant dense<0xFF800000> : vector<1024xf32>
    %17 = vector.multi_reduction <maximumf>, %5, %cst [0] : vector<17x1024xf32> to vector<1024xf32>
    %18 = vector.shape_cast %17 : vector<1024xf32> to vector<1x1024xf32>
    %19 = vector.broadcast %18 : vector<1x1024xf32> to vector<17x1024xf32>
    %20 = arith.subf %5, %19 : vector<17x1024xf32>
    %21 = math.exp %20 : vector<17x1024xf32>
    %cst_6 = arith.constant dense<0.000000e+00> : vector<1024xf32>
    %22 = vector.multi_reduction <add>, %21, %cst_6 [0] : vector<17x1024xf32> to vector<1024xf32>
    %23 = vector.shape_cast %22 : vector<1024xf32> to vector<1x1024xf32>
    %24 = tpu.reciprocal %23 : vector<1x1024xf32> -> vector<1x1024xf32>
    %25 = vector.broadcast %24 : vector<1x1024xf32> to vector<17x1024xf32>
    %26 = arith.mulf %21, %25 : vector<17x1024xf32>
    %27 = math.log %23 : vector<1x1024xf32>
    %28 = vector.broadcast %27 : vector<1x1024xf32> to vector<17x1024xf32>
    %29 = arith.subf %28, %20 : vector<17x1024xf32>
    %30 = vector.broadcast %11 : vector<1x1024xf32> to vector<17x1024xf32>
    %31 = arith.mulf %16, %30 : vector<17x1024xf32>
    %32 = vector.broadcast %11 : vector<1x1024xf32> to vector<17x1024xf32>
    %33 = arith.mulf %26, %32 : vector<17x1024xf32>
    %34 = arith.subf %31, %33 : vector<17x1024xf32>
    %35 = math.absf %34 : vector<17x1024xf32>
    %36 = arith.truncf %35 : vector<17x1024xf32> to vector<17x1024xbf16>
    %c0_7 = arith.constant 0 : index
    %c0_8 = arith.constant 0 : index
    %37 = vector.load %arg5[%c0_7, %c0_8] : memref<17x1024xbf16, #tpu.memory_space<vmem>>, vector<17x1024xbf16>
    tpu.vector_store %arg5[%c0_7, %c0_8], %36 {strides = array<i32>} : memref<17x1024xbf16, #tpu.memory_space<vmem>>, vector<17x1024xbf16>,
    %38 = arith.mulf %31, %29 : vector<17x1024xf32>
    %cst_9 = arith.constant dense<0.000000e+00> : vector<17xf32>
    %39 = vector.multi_reduction <add>, %38, %cst_9 [1] : vector<17x1024xf32> to vector<17xf32>
    %40 = vector.shape_cast %39 : vector<17xf32> to vector<17x1xf32>
    %cst_10 = arith.constant dense<0.000000e+00> : vector<17xf32>
    %41 = vector.multi_reduction <add>, %33, %cst_10 [1] : vector<17x1024xf32> to vector<17xf32>
    %42 = vector.shape_cast %41 : vector<17xf32> to vector<17x1xf32>
    %cst_11 = arith.constant dense<0.000000e+00> : vector<17xf32>
    %43 = vector.multi_reduction <add>, %31, %cst_11 [1] : vector<17x1024xf32> to vector<17xf32>
    %44 = vector.shape_cast %43 : vector<17xf32> to vector<17x1xf32>
    %45 = arith.mulf %33, %16 : vector<17x1024xf32>
    %cst_12 = arith.constant dense<0.000000e+00> : vector<17xf32>
    %46 = vector.multi_reduction <add>, %45, %cst_12 [1] : vector<17x1024xf32> to vector<17xf32>
    %47 = vector.shape_cast %46 : vector<17xf32> to vector<17x1xf32>
    %cst_13 = arith.constant dense<0.000000e+00> : vector<1xf32>
    %48 = vector.multi_reduction <add>, %11, %cst_13 [1] : vector<1x1024xf32> to vector<1xf32>
    %49 = vector.shape_cast %48 : vector<1xf32> to vector<1x1xf32>
    %50 = vector.shape_cast %49 : vector<1x1xf32> to vector<1x1xf32>
    %51 = vector.broadcast %50 : vector<1x1xf32> to vector<17x1xf32>
    %52 = tpu.iota {dimensions = array<i32: 1>} : vector<17x5xi32>
    %c0_i32_14 = arith.constant 0 : i32
    %53 = vector.broadcast %c0_i32_14 : i32 to vector<17x5xi32>
    %54 = arith.cmpi eq, %52, %53 : vector<17x5xi32>
    %cst_15 = arith.constant 0.000000e+00 : f32
    %55 = vector.shape_cast %40 : vector<17x1xf32> to vector<17x1xf32>
    %56 = vector.broadcast %55 : vector<17x1xf32> to vector<17x5xf32>
    %57 = vector.broadcast %cst_15 : f32 to vector<17x5xf32>
    %58 = arith.select %54, %56, %57 : vector<17x5xi1>, vector<17x5xf32>
    %c1_i32 = arith.constant 1 : i32
    %59 = vector.broadcast %c1_i32 : i32 to vector<17x5xi32>
    %60 = arith.cmpi eq, %52, %59 : vector<17x5xi32>
    %61 = vector.shape_cast %42 : vector<17x1xf32> to vector<17x1xf32>
    %62 = vector.broadcast %61 : vector<17x1xf32> to vector<17x5xf32>
    %63 = arith.select %60, %62, %58 : vector<17x5xi1>, vector<17x5xf32>
    %c2_i32 = arith.constant 2 : i32
    %64 = vector.broadcast %c2_i32 : i32 to vector<17x5xi32>
    %65 = arith.cmpi eq, %52, %64 : vector<17x5xi32>
    %66 = vector.shape_cast %44 : vector<17x1xf32> to vector<17x1xf32>
    %67 = vector.broadcast %66 : vector<17x1xf32> to vector<17x5xf32>
    %68 = arith.select %65, %67, %63 : vector<17x5xi1>, vector<17x5xf32>
    %c3_i32 = arith.constant 3 : i32
    %69 = vector.broadcast %c3_i32 : i32 to vector<17x5xi32>
    %70 = arith.cmpi eq, %52, %69 : vector<17x5xi32>
    %71 = vector.shape_cast %47 : vector<17x1xf32> to vector<17x1xf32>
    %72 = vector.broadcast %71 : vector<17x1xf32> to vector<17x5xf32>
    %73 = arith.select %70, %72, %68 : vector<17x5xi1>, vector<17x5xf32>
    %c4_i32 = arith.constant 4 : i32
    %74 = vector.broadcast %c4_i32 : i32 to vector<17x5xi32>
    %75 = arith.cmpi eq, %52, %74 : vector<17x5xi32>
    %76 = vector.shape_cast %51 : vector<17x1xf32> to vector<17x1xf32>
    %77 = vector.broadcast %76 : vector<17x1xf32> to vector<17x5xf32>
    %78 = arith.select %75, %77, %73 : vector<17x5xi1>, vector<17x5xf32>
    %c0_16 = arith.constant 0 : index
    %c0_17 = arith.constant 0 : index
    %c0_18 = arith.constant 0 : index
    %c0_19 = arith.constant 0 : index
    %79 = vector.load %arg6[%c0_16, %c0_17, %c0_18, %c0_19] : memref<1x1x17x5xf32, #tpu.memory_space<vmem>>, vector<1x1x17x5xf32>
    %80 = vector.shape_cast %79 : vector<1x1x17x5xf32> to vector<17x5xf32>
    %81 = arith.addf %80, %78 : vector<17x5xf32>
    %c0_20 = arith.constant 0 : index
    %c0_21 = arith.constant 0 : index
    %c0_22 = arith.constant 0 : index
    %c0_23 = arith.constant 0 : index
    %82 = vector.load %arg6[%c0_20, %c0_21, %c0_22, %c0_23] : memref<1x1x17x5xf32, #tpu.memory_space<vmem>>, vector<1x1x17x5xf32>
    %83 = vector.shape_cast %82 : vector<1x1x17x5xf32> to vector<17x5xf32>
    %84 = vector.shape_cast %81 : vector<17x5xf32> to vector<1x1x17x5xf32>
    tpu.vector_store %arg6[%c0_20, %c0_21, %c0_22, %c0_23], %84 {strides = array<i32>} : memref<1x1x17x5xf32, #tpu.memory_space<vmem>>, vector<1x1x17x5xf32>,
    return
  }
  func.func @transform_0(%arg0: i32, %arg1: i32, %arg2: i32) -> (i32, i32, i32) {
    %c1_i32 = arith.constant 1 : i32
    %0 = arith.muli %arg0, %c1_i32 : i32
    %1 = arith.addi %0, %arg2 : i32
    %c0_i32 = arith.constant 0 : i32
    %c0_i32_0 = arith.constant 0 : i32
    return %arg1, %c0_i32, %1 : i32, i32, i32
  }
  func.func @transform_1(%arg0: i32, %arg1: i32, %arg2: i32) -> (i32, i32, i32) {
    %c1_i32 = arith.constant 1 : i32
    %0 = arith.muli %arg0, %c1_i32 : i32
    %1 = arith.addi %0, %arg2 : i32
    %c0_i32 = arith.constant 0 : i32
    %c0_i32_0 = arith.constant 0 : i32
    return %arg1, %c0_i32, %1 : i32, i32, i32
  }
  func.func @transform_2(%arg0: i32, %arg1: i32, %arg2: i32) -> (i32, i32) {
    %c2_i32 = arith.constant 2 : i32
    %0 = arith.muli %arg1, %c2_i32 : i32
    %c1_i32 = arith.constant 1 : i32
    %1 = arith.muli %arg0, %c1_i32 : i32
    %2 = arith.addi %0, %1 : i32
    %3 = arith.addi %2, %arg2 : i32
    %c0_i32 = arith.constant 0 : i32
    %c0_i32_0 = arith.constant 0 : i32
    return %c0_i32, %3 : i32, i32
  }
  func.func @transform_3(%arg0: i32, %arg1: i32, %arg2: i32) -> (i32, i32, i32, i32) {
    %c0_i32 = arith.constant 0 : i32
    %c0_i32_0 = arith.constant 0 : i32
    %c0_i32_1 = arith.constant 0 : i32
    return %arg0, %arg1, %c0_i32, %c0_i32_0 : i32, i32, i32, i32
  }
}

</mosaic_0001>

<bundles_post_ra>
// kernel: tpu_custom_call.1
= control target key start
LH: loop header
LB: loop body
LE: loop exit
PB: predicated region body
PF: predicated region fallthrough
CT: control target
= control target key end

     0   :  { %9 = vsyncpa [#allocation4], 0  ;;  %s3079_s0 = inlined_call_operand.vmem [shape: bf16[2,17,2048], index: 0, kind: input, shape index: {}]   ;;  %s3080_s1 = inlined_call_operand.vmem [shape: s32[2,1,2048], index: 1, kind: input, shape index: {}]   ;;  %s3081_s2 = inlined_call_operand.hbm [shape: bf16[17,4096], index: 2, kind: output, shape index: {0}]   ;;  %s3082_s3 = inlined_call_operand.vmem [shape: f32[2,2,17,5], index: 3, kind: output, shape index: {1}]  }
   0x1   :  { %11 = vsyncpa [#allocation4 + $0x1], 0  ;;  %s1797_s12 = smov 0   ;;  %s1799_s13 = smov 0  }
   0x2   :  { %s1801_s14 = smov 0   ;;  %s1803_s15 = smov 0  }
   0x3   :  { %s1805_s16 = smov 0   ;;  %s1807_s17 = smov 0  }
   0x4   :  { %s1809_s18 = smov 0   ;;  %s1811_s19 = smov 0  }
   0x5   :  { %s1813_s20 = smov 0   ;;  %s1815_s21 = smov 0  }
   0x6 LB: > { %s1418_s22 = sadd.s32 4294967295, %s1770_s21   ;;  %s1419_s23 = sadd.s32 4294967294, %s1770_s21   ;;  %s1770_s21 = sphi %s1815_s21, %s17_s21   ;;  %s1766_s20 = sphi %s1813_s20, %s3433_s20   ;;  %s1762_s19 = sphi %s1811_s19, %s3432_s19   ;;  %s1758_s18 = sphi %s1809_s18, %s3431_s18   ;;  %s1754_s17 = sphi %s1807_s17, %s3430_s17   ;;  %s1750_s16 = sphi %s1805_s16, %s3429_s16   ;;  %s1746_s15 = sphi %s1803_s15, %s3428_s15   ;;  %s1742_s14 = sphi %s1801_s14, %s3427_s14   ;;  %s1738_s13 = sphi %s1799_s13, %s3426_s13   ;;  %s1734_s12 = sphi %s1797_s12, %s3425_s12  }
   0x7   : > { %s32_s24 = sadd.s32 1, %s1762_s19  ;;  %s36_s25 = sadd.s32 1, %s1766_s20 }
   0x8   : > { %p34_p0 = scmp.ge.s32.totalorder %s32_s24, 2  ;;  %s47_s26 = sadd.s32 1, %s1750_s16 }
   0x9   : > { %p54_p1 = scmp.ne.s32.totalorder %s1750_s16, %s1746_s15  ;;  %p55_p2 = scmp.eq.s32.totalorder %s1770_s21, 0 }
   0xa   : > { %s3435_s24 = smov (%p34_p0, %s32_s24), 0  ;;  %s3437_s25 = smov (!%p34_p0, %s36_s25), %s1766_s20 }
   0xb   : > { %3193 = sst [smem:[#allocation6_spill]] %s3435_s24  ;;  %s42_s27 = ssub.s32 %s1762_s19, %s3435_s24 }
   0xc   : > { %p1860_p3 = por %p55_p2, %p54_p1  ;;  %p38_p4 = scmp.ge.s32.totalorder %s3437_s25, 2 }
   0xd   : > { %s1420_s29 = sshll.u32 %s1762_s19, 1  ;;  %s1421_s4 = sshll.u32 %s3435_s24, 1 }
   0xe   : > { %s101_s30 = sadd.s32 %s1766_s20, %s1420_s29  ;;  %s3439_s25 = smov (%p38_p4, %s3437_s25), 0 }
   0xf   : > { %s109_s5 = sadd.s32 1, %s1742_s14  ;;  %p119_p5 = scmp.ne.s32.totalorder %s1742_s14, %s1738_s13 }
  0x10   : > { %s43_s6 = ssub.s32 %s1766_s20, %s3439_s25  ;;  %s104_s7 = sadd.s32 %s1421_s4, %s3439_s25 }
  0x11   : > { %s44_s8 = sor.u32 %s43_s6, %s42_s27  ;;  %s106_s9 = ssub.s32 %s101_s30, %s104_s7 }
  0x12   : > { %p45_p6 = scmp.eq.s32.totalorder %s44_s8, 0  ;;  %p107_p7 = scmp.eq.s32.totalorder %s106_s9, 0 }
  0x13   : > { %p120_p8 = scmp.eq.s32.totalorder %s1418_s22, 3  ;;  %p125_p9 = scmp.ne.s32.totalorder %s1738_s13, %s1734_s12 }
  0x14   : > { %s1878_s10 = scalar_select %p45_p6, %s1750_s16, %s47_s26  }
  0x15   : > { %s1881_s11 = scalar_select %p107_p7, %s1742_s14, %s109_s5  }
  0x16   : > { %p1883_p10 = por %p120_p8, %p119_p5  ;;  %p126_p11 = scmp.eq.s32.totalorder %s1419_s23, 3 }
  0x17   : > { %p1423_p13 = scmp.ge.s32.totalorder %s1770_s21, 4 }
  0x18   : > { %p1887_p12 = por %p126_p11, %p125_p9 }
  0x19   : > { %170 = sbr.rel (%p1423_p13) target bundleno = 44 (0x2c), region = 16 }
  0x1e   : > { %173 = sbr.rel (!%p1860_p3) target bundleno = 44 (0x2c), region = 20  ;;  %s175_s22 = sand.u32 (%p1860_p3), 1, %s1750_s16  }
  0x1f   : > { %s1485_s26 = smul.u32 (%p1860_p3), 96, %s175_s22  ;;  %s1424_s27 = sshll.u32 (%p1860_p3), %s1766_s20, 3 }
  0x20   : > { %s1486_s30 = smul.u32 (%p1860_p3), 48, %s1762_s19 }
  0x21   : > { %s177_s8 = scalar_lea.vmem (%p1860_p3), [#allocation2], %s1485_s26 }
  0x22   : > { %s181_s4 = sadd.s32 (%p1860_p3), %s1486_s30, %s1424_s27 }
  0x23   : > { %s1425_s5 = sshll.u32 %s181_s4, 2 }
  0x24   : > { %s183_s7 = scalar_lea.vmem %s3079_s0, %s1425_s5 }
  0x25   : > { %v196_v0 = vld [vmem:[%s183_s7] sm:$0xff]  ;;  %v198_v1 = vld [vmem:[%s183_s7 + $0x8] sm:$0xff]  ;;  %v200_v2 = vld [vmem:[%s183_s7 + $0x10] sm:$0xff] }
  0x26   : > { %197 = vst [vmem:[%s177_s8] sm:$0xff] %v196_v0  ;;  %199 = vst [vmem:[%s177_s8 + $0x8] sm:$0xff] %v198_v1  ;;  %v202_v3 = vld [vmem:[%s183_s7 + $0x18] sm:$0xff]  ;;  %v204_v4 = vld [vmem:[%s183_s7 + $0x40] sm:$0xff] }
  0x27   : > { %201 = vst [vmem:[%s177_s8 + $0x10] sm:$0xff] %v200_v2  ;;  %v206_v5 = vld [vmem:[%s183_s7 + $0x48] sm:$0xff]  ;;  %203 = vst [vmem:[%s177_s8 + $0x18] sm:$0xff] %v202_v3  ;;  %v208_v6 = vld [vmem:[%s183_s7 + $0x50] sm:$0xff] }
  0x28   : > { %205 = vst [vmem:[%s177_s8 + $0x20] sm:$0xff] %v204_v4  ;;  %207 = vst [vmem:[%s177_s8 + $0x28] sm:$0xff] %v206_v5  ;;  %v210_v7 = vld [vmem:[%s183_s7 + $0x58] sm:$0xff]  ;;  %v212_v8 = vld [vmem:[%s183_s7 + $0x80] sm:$0xff] }
  0x29   : > { %209 = vst [vmem:[%s177_s8 + $0x30] sm:$0xff] %v208_v6  ;;  %211 = vst [vmem:[%s177_s8 + $0x38] sm:$0xff] %v210_v7  ;;  %v214_v9 = vld [vmem:[%s183_s7 + $0x88] sm:$0xff]  ;;  %v216_v10 = vld [vmem:[%s183_s7 + $0x90] sm:$0xff] }
  0x2a   : > { %213 = vst [vmem:[%s177_s8 + $0x40] sm:$0xff] %v212_v8  ;;  %v218_v11 = vld [vmem:[%s183_s7 + $0x98] sm:$0xff]  ;;  %215 = vst [vmem:[%s177_s8 + $0x48] sm:$0xff] %v214_v9 }
  0x2b   : > { %217 = vst [vmem:[%s177_s8 + $0x50] sm:$0xff] %v216_v10  ;;  %219 = vst [vmem:[%s177_s8 + $0x58] sm:$0xff] %v218_v11 }
  0x2c PF: > { %p1426_p0 = scmp.ge.s32.totalorder %s1770_s21, 1  ;;  %p238_p1 = scmp.lt.s32.totalorder %s1770_s21, 5 }
  0x2e   : > { %p239_p2 = pnand %p1426_p0, %p238_p1 }
  0x30   : > { %242 = sbr.rel (%p239_p2) target bundleno = 408 (0x198), region = 47 }
  0x35   : > { %s1427_s28 = sshll.u32 %s1758_s18, 3  ;;  %p290_p3 = scmp.lt.s32.totalorder %s1754_s17, 1  ;;  %v3084_v12 = vlaneseq  ;;  %vm470_vm0 = vcmask 1040384   ;;  %v3085_v28 = vmov 0.0  }
  0x36   : > { %p292_p4 = scmp.lt.s32.totalorder %s1427_s28, 15  ;;  %s245_s5 = sand.u32 1, %s1746_s15  }
  0x37   : > { %s1905_s9 = scalar_select %p290_p3, %s1754_s17, 1  ;;  %v1908_v13 = vshrl.u32 %v3084_v12, 7 }
  0x38   : > { %s3441_s28 = smov (!%p292_p4, %s1427_s28), 15  ;;  %s1487_s15 = smul.u32 96, %s245_s5 }
  0x39   : > { %s1428_s22 = sshll.u32 %s1905_s9, 4  ;;  %v1912_v14 = vsub.s32 0, %v1908_v13  ;;  %v371_v15 = vsub.s32 1, %v1908_v13  ;;  %v375_v16 = vsub.s32 2, %v1908_v13  ;;  %v379_v17 = vsub.s32 3, %v1908_v13  ;;  %s272_s6 = sand.u32 1, %s1738_s13  }
  0x3a   : > { %s295_s26 = sadd.s32 %s1428_s22, %s3441_s28  ;;  %v383_v18 = vsub.s32 4, %v1908_v13  ;;  %v387_v19 = vsub.s32 5, %v1908_v13  ;;  %v391_v21 = vsub.s32 6, %v1908_v13  ;;  %v395_v22 = vsub.s32 7, %v1908_v13  ;;  %s2211_s23 = scalar_lea.vmem [#allocation2], %s1487_s15 }
  0x3b   : > { %3197 = vst [vmem:[#allocation7_spill] sm:$0xff] %v1912_v14  ;;  %s296_s4 = scalar_lea.vmem %s3080_s1, %s295_s26  ;;  %v1925_v23 = vadd.s32 8, %v1908_v13  ;;  %v1928_v24 = vadd.s32 16, %v1908_v13  ;;  %s1488_s7 = smul.u32 96, %s272_s6 }
  0x3c   : > { %v357_v20 = vld [vmem:[%s296_s4] sm:$0xff]  ;;  %p303_p5 = scmp.lt.s32.totalorder %s1758_s18, 1  ;;  %s1489_s22 = smul.u32 3, %s1905_s9 }
  0x3d   : > { %vm358_vm1 = vcmp.ne.s32.totalorder %v357_v20, 255  ;;  %v1931_v25 = vrot.slane %v357_v20, %v1912_v14  ;;  %v1933_v26 = vrot.slane %v357_v20, %v371_v15  ;;  %v1935_v27 = vrot.slane %v357_v20, %v375_v16  ;;  %s2648_s8 = scalar_lea.vmem [#allocation3], %s1488_s7  ;;  %s1467_s9 = sshll.u32 %s1754_s17, 1 }
  0x3e   : > { %v1430_v29 = vsel %vm358_vm1, 1.0, %v3085_v28  ;;  %v1938_v30 = vrot.slane %v357_v20, %v379_v17  ;;  %v1940_v31 = vrot.slane %v357_v20, %v383_v18  ;;  %v1942_v32 = vrot.slane %v357_v20, %v387_v19  ;;  %s304_s28 = scalar_select %p303_p5, %s1758_s18, 1 }
  0x3f   : > { %v1945_v33 = vrot.slane %v1430_v29, %v1912_v14  ;;  %v1947_v34 = vrot.slane %v1430_v29, %v371_v15  ;;  %v1949_v35 = vrot.slane %v1430_v29, %v375_v16  ;;  %v1951_v36 = vrot.slane %v1430_v29, %v379_v17  ;;  %s1773_s17 = smov [#allocation3]  }
  0x40   : > { %v1953_v37 = vrot.slane %v1430_v29, %v383_v18  ;;  %v1955_v38 = vrot.slane %v1430_v29, %v387_v19  ;;  %v1957_v39 = vrot.slane %v1430_v29, %v391_v21  ;;  %v1959_v40 = vrot.slane %v1430_v29, %v395_v22  ;;  %s1490_s26 = smul.u32 6, %s304_s28  ;;  %s1270_s28 = sshll.u32 %s2648_s8, 4  ;;  %s2992_s28 = int_to_ptr.vmem [resolvable:$true] %s1270_s28 }
  0x41   : > { %v1190_v41 = vsel %vm470_vm0, %v1945_v33, 0.0  ;;  %v1191_v42 = vsel %vm470_vm0, %v1947_v34, 0.0  ;;  %v1193_v43 = vsel %vm470_vm0, %v1949_v35, 0.0  ;;  %v1195_v44 = vsel %vm470_vm0, %v1951_v36, 0.0  ;;  %s1662_s4 = scalar_lea.vmem %s2992_s28, 1536 }
  0x42   : > { %3198 = vst [vmem:[#allocation8_spill] sm:$0xff] %v1959_v40  ;;  %v1192_v45 = vadd.f32 %v1191_v42, %v1190_v41  ;;  %v1197_v46 = vsel %vm470_vm0, %v1953_v37, 0.0  ;;  %v1199_v47 = vsel %vm470_vm0, %v1955_v38, 0.0  ;;  %v1201_v48 = vsel %vm470_vm0, %v1957_v39, 0.0  ;;  %s309_s27 = sadd.s32 %s1490_s26, %s1489_s22  ;;  %p1663_p6 = scmp.ne.s32.totalorder %s2992_s28, %s1662_s4 }
  0x43   : > { %v1203_v49 = vsel %vm470_vm0, %v1959_v40, 0.0  ;;  %v1977_v50 = vrot.slane %v357_v20, %v391_v21  ;;  %v1979_v51 = vrot.slane %v357_v20, %v395_v22  ;;  %vm397_vm2 = vcmp.eq.s32.totalorder %v1908_v13, %v1931_v25  ;;  %s1429_s30 = sshll.u32 %s309_s27, 3 }
  0x44   : > { %v1194_v52 = vadd.f32 %v1193_v43, %v1192_v45  ;;  %vm398_vm3 = vcmp.eq.s32.totalorder %v1908_v13, %v1933_v26  ;;  %vm399_vm4 = vcmp.eq.s32.totalorder %v1908_v13, %v1935_v27  ;;  %vm400_vm5 = vcmp.eq.s32.totalorder %v1908_v13, %v1938_v30  ;;  %s2973_s15 = scalar_lea.vmem %s3082_s3, %s1429_s30  ;;  %s2996_s30 = scalar_lea.sflag [#allocation4], %s272_s6 }
  0x45   : > { %vm401_vm6 = vcmp.eq.s32.totalorder %v1908_v13, %v1940_v31  ;;  %vm402_vm7 = vcmp.eq.s32.totalorder %v1908_v13, %v1942_v32  ;;  %vm403_vm8 = vcmp.eq.s32.totalorder %v1908_v13, %v1977_v50  ;;  %vm404_vm9 = vcmp.eq.s32.totalorder %v1908_v13, %v1979_v51  ;;  %p1664_p7 = pnand %p1663_p6, %p1883_p10 }
  0x46   : > { %v1196_v53 = vadd.f32 %v1195_v44, %v1194_v52  ;;  %v1998_v54 = vsel %vm397_vm2, 1.0, %v3085_v28  ;;  %v2001_v55 = vsel %vm398_vm3, 1.0, %v3085_v28  ;;  %v2004_v56 = vsel %vm399_vm4, 1.0, %v3085_v28 }
  0x47   : > { %3199 = vst [vmem:[#allocation9_spill] sm:$0xff] %v1998_v54  ;;  %3200 = vst [vmem:[#allocation10_spill] sm:$0xff] %v2001_v55  ;;  %v2007_v57 = vsel %vm400_vm5, 1.0, %v3085_v28  ;;  %v2010_v58 = vsel %vm401_vm6, 1.0, %v3085_v28  ;;  %v2013_v59 = vsel %vm402_vm7, 1.0, %v3085_v28  ;;  %v2016_v60 = vsel %vm403_vm8, 1.0, %v3085_v28  ;;  %p1665_p8 = pneg %p1664_p7 }
  0x48   : > { %3201 = vst [vmem:[#allocation11_spill] sm:$0xff] %v2004_v56  ;;  %3202 = vst [vmem:[#allocation12_spill] sm:$0xff] %v2007_v57  ;;  %v1198_v61 = vadd.f32 %v1197_v46, %v1196_v53  ;;  %v2019_v62 = vsel %vm404_vm9, 1.0, %v3085_v28  ;;  %v2023_v63 = vmul.f32 %v1998_v54, %v1945_v33  ;;  %v2027_v0 = vmul.f32 %v2001_v55, %v1947_v34 }
  0x49   : > { %3203 = vst [vmem:[#allocation13_spill] sm:$0xff] %v2010_v58  ;;  %3204 = vst [vmem:[#allocation14_spill] sm:$0xff] %v2013_v59  ;;  %v2031_v1 = vmul.f32 %v2004_v56, %v1949_v35  ;;  %v2035_v2 = vmul.f32 %v2007_v57, %v1951_v36  ;;  %v2039_v3 = vmul.f32 %v2010_v58, %v1953_v37  ;;  %v2267_v58 = vld [vmem:[%s2211_s23 + $0x48] sm:$0x11] }
  0x4a   : > { %3205 = vst [vmem:[#allocation15_spill] sm:$0xff] %v2016_v60  ;;  %3206 = vst [vmem:[#allocation16_spill] sm:$0xff] %v2019_v62  ;;  %v2043_v4 = vmul.f32 %v2013_v59, %v1955_v38  ;;  %v1200_v5 = vadd.f32 %v1199_v47, %v1198_v61  ;;  %v2047_v6 = vmul.f32 %v2016_v60, %v1957_v39  ;;  %v2261_v60 = vld [vmem:[%s2211_s23 + $0x40] sm:$0x11]  ;;  %v3254_v54 = vunpack.c.h.bf16 %v2267_v58 }
  0x4b   : > { %3207 = vst [vmem:[#allocation17_spill] sm:$0xff] %v2023_v63  ;;  %3208 = vst [vmem:[#allocation18_spill] sm:$0xff] %v2027_v0  ;;  %v2051_v7 = vmul.f32 %v2019_v62, %v1959_v40  ;;  %v1096_v8 = vadd.f32 %v2027_v0, %v2023_v63  ;;  %vm405_vm10 = vcmp.eq.s32.totalorder %v1925_v23, %v1931_v25 }
  0x4c   : > { %3209 = vst [vmem:[#allocation19_spill] sm:$0xff] %v2031_v1  ;;  %3210 = vst [vmem:[#allocation20_spill] sm:$0xff] %v2035_v2  ;;  %vm406_vm11 = vcmp.eq.s32.totalorder %v1925_v23, %v1933_v26  ;;  %vm407_vm12 = vcmp.eq.s32.totalorder %v1925_v23, %v1935_v27  ;;  %vm408_vm13 = vcmp.eq.s32.totalorder %v1925_v23, %v1938_v30  ;;  %v2073_v11 = vsel %vm405_vm10, 1.0, %v3085_v28 }
  0x4d   : > { %3211 = vst [vmem:[#allocation21_spill] sm:$0xff] %v2039_v3  ;;  %3212 = vst [vmem:[#allocation22_spill] sm:$0xff] %v2043_v4  ;;  %v1202_v9 = vadd.f32 %v1201_v48, %v1200_v5  ;;  %v1097_v10 = vadd.f32 %v1096_v8, %v2031_v1  ;;  %vm409_vm14 = vcmp.eq.s32.totalorder %v1925_v23, %v1940_v31  ;;  %v2076_v13 = vsel %vm406_vm11, 1.0, %v3085_v28 }
  0x4e   : > { %3213 = vst [vmem:[#allocation23_spill] sm:$0xff] %v2047_v6  ;;  %3214 = vst [vmem:[#allocation24_spill] sm:$0xff] %v2051_v7  ;;  %vm410_vm15 = vcmp.eq.s32.totalorder %v1925_v23, %v1942_v32  ;;  %vm411_vm1 = vcmp.eq.s32.totalorder %v1925_v23, %v1977_v50  ;;  %vm412_vm2 = vcmp.eq.s32.totalorder %v1925_v23, %v1979_v51  ;;  %v2080_v17 = vsel %vm407_vm12, 1.0, %v3085_v28 }
  0x4f   : > { %3215 = vst [vmem:[#allocation25_spill] sm:$0xff] %v2073_v11  ;;  %3216 = vst [vmem:[#allocation26_spill] sm:$0xff] %v2076_v13  ;;  %v1204_v15 = vadd.f32 %v1203_v49, %v1202_v9  ;;  %v1098_v16 = vadd.f32 %v1097_v10, %v2035_v2  ;;  %v2083_v18 = vsel %vm408_vm13, 1.0, %v3085_v28  ;;  %v2086_v19 = vsel %vm409_vm14, 1.0, %v3085_v28 }
  0x50   : > { %3217 = vst [vmem:[#allocation27_spill] sm:$0xff] %v2080_v17  ;;  %3218 = vst [vmem:[#allocation28_spill] sm:$0xff] %v2083_v18  ;;  %v2089_v20 = vsel %vm410_vm15, 1.0, %v3085_v28  ;;  %v2092_v21 = vsel %vm411_vm1, 1.0, %v3085_v28  ;;  %v2095_v22 = vsel %vm412_vm2, 1.0, %v3085_v28  ;;  %v2101_v29 = vmul.f32 %v2073_v11, %v1945_v33 }
  0x51   : > { %3219 = vst [vmem:[#allocation29_spill] sm:$0xff] %v2086_v19  ;;  %3220 = vst [vmem:[#allocation30_spill] sm:$0xff] %v2089_v20  ;;  %1205 = vadd.xlane.f32.xlu1 %v1204_v15  ;;  %v1099_v23 = vadd.f32 %v1098_v16, %v2039_v3  ;;  %v2105_v41 = vmul.f32 %v2076_v13, %v1947_v34  ;;  %v2109_v42 = vmul.f32 %v2080_v17, %v1949_v35  ;;  %v2276_v17 = vld [vmem:[%s2211_s23 + $0x58] sm:$0x11]  ;;  %vm984_vm11 = vsmask.f32 256 }
  0x52   : > { %3221 = vst [vmem:[#allocation31_spill] sm:$0xff] %v2092_v21  ;;  %3222 = vst [vmem:[#allocation32_spill] sm:$0xff] %v2095_v22  ;;  %v2113_v43 = vmul.f32 %v2083_v18, %v1951_v36  ;;  %v2117_v44 = vmul.f32 %v2086_v19, %v1953_v37  ;;  %v2121_v45 = vmul.f32 %v2089_v20, %v1955_v38  ;;  %v2258_v18 = vld [vmem:[%s2211_s23 + $0x38] sm:$0xff]  ;;  %v2270_v19 = vld [vmem:[%s2211_s23 + $0x50] sm:$0x11]  ;;  %vm986_vm12 = vcmask 1044484  }
  0x53   : > { %3223 = vst [vmem:[#allocation33_spill] sm:$0xff] %v2109_v42  ;;  %v2125_v46 = vmul.f32 %v2092_v21, %v1957_v39  ;;  %v1100_v47 = vadd.f32 %v1099_v23, %v2043_v4  ;;  %v2130_v48 = vmul.f32 %v2095_v22, %v1959_v40  ;;  %v1105_v49 = vadd.f32 %v2105_v41, %v2101_v29  ;;  %v2233_v22 = vld [vmem:[%s2211_s23 + $0x10] sm:$0xff]  ;;  %vm2791_vm14 = vmand %vm470_vm0, %vm984_vm11 }
  0x54   : > { %3224 = vst [vmem:[#allocation34_spill] sm:$0xff] %v2113_v43  ;;  %3225 = vst [vmem:[#allocation35_spill] sm:$0xff] %v2117_v44  ;;  %vm413_vm3 = vcmp.eq.s32.totalorder %v1928_v24, %v1931_v25  ;;  %vm414_vm4 = vcmp.eq.s32.totalorder %v1928_v24, %v1933_v26  ;;  %vm415_vm5 = vcmp.eq.s32.totalorder %v1928_v24, %v1935_v27  ;;  %vm987_vm13 = vsmask.f32 4352 }
  0x55   : > { %3226 = vst [vmem:[#allocation36_spill] sm:$0xff] %v2121_v45  ;;  %3227 = vst [vmem:[#allocation37_spill] sm:$0xff] %v2125_v46  ;;  %vm416_vm6 = vcmp.eq.s32.totalorder %v1928_v24, %v1938_v30  ;;  %vm417_vm7 = vcmp.eq.s32.totalorder %v1928_v24, %v1940_v31  ;;  %v1101_v52 = vadd.f32 %v1100_v47, %v2047_v6  ;;  %v2153_v25 = vsel %vm413_vm3, 1.0, %v3085_v28 }
  0x56   : > { %3228 = vst [vmem:[#allocation38_spill] sm:$0xff] %v2130_v48  ;;  %v1106_v53 = vadd.f32 %v1105_v49, %v2109_v42  ;;  %vm418_vm8 = vcmp.eq.s32.totalorder %v1928_v24, %v1942_v32  ;;  %vm419_vm9 = vcmp.eq.s32.totalorder %v1928_v24, %v1977_v50  ;;  %vm420_vm10 = vcmp.eq.s32.totalorder %v1928_v24, %v1979_v51  ;;  %vm2805_vm15 = vmand %vm986_vm12, %vm987_vm13 }
  0x57   : > { %3229 = vst [vmem:[#allocation39_spill] sm:$0xff] %v2153_v25  ;;  %v2156_v26 = vsel %vm414_vm4, 1.0, %v3085_v28  ;;  %v2159_v27 = vsel %vm415_vm5, 1.0, %v3085_v28  ;;  %v1102_v30 = vadd.f32 %v1101_v52, %v2051_v7  ;;  %v2164_v32 = vsel %vm416_vm6, 1.0, %v3085_v28  ;;  %v2214_v52 = vld [vmem:[%s2211_s23] sm:$0xff]  ;;  %vm2824_vm1 = vmor %vm2805_vm15, %vm2791_vm14 }
  0x58   : > { %3230 = vst [vmem:[#allocation40_spill] sm:$0xff] %v2156_v26  ;;  %3231 = vst [vmem:[#allocation41_spill] sm:$0xff] %v2159_v27  ;;  %v1107_v31 = vadd.f32 %v1106_v53, %v2113_v43  ;;  %v2167_v50 = vsel %vm417_vm7, 1.0, %v3085_v28  ;;  %v2170_v24 = vsel %vm418_vm8, 1.0, %v3085_v28  ;;  %v2173_v51 = vsel %vm419_vm9, 1.0, %v3085_v28 }
  0x59   : > { %3232 = vst [vmem:[#allocation42_spill] sm:$0xff] %v2164_v32  ;;  %3233 = vst [vmem:[#allocation43_spill] sm:$0xff] %v2167_v50  ;;  %v2176_v61 = vsel %vm420_vm10, 1.0, %v3085_v28  ;;  %v2180_v5 = vmul.f32 %v2153_v25, %v1945_v33  ;;  %1103 = vadd.xlane.f32.xlu0 %v1102_v30  ;;  %v2185_v9 = vmul.f32 %v2156_v26, %v1947_v34  ;;  %v2224_v28 = vld [vmem:[%s2211_s23 + $0x8] sm:$0xff]  ;;  %v3109_v26 = vunpack.c.l.bf16 %v2261_v60 }
  0x5a   : > { %3234 = vst [vmem:[#allocation44_spill] sm:$0xff] %v2170_v24  ;;  %3235 = vst [vmem:[#allocation45_spill] sm:$0xff] %v2173_v51  ;;  %v1108_v8 = vadd.f32 %v1107_v31, %v2117_v44  ;;  %v2189_v10 = vmul.f32 %v2159_v27, %v1949_v35  ;;  %v2193_v15 = vmul.f32 %v2164_v32, %v1951_v36  ;;  %v2248_v32 = vld [vmem:[%s2211_s23 + $0x28] sm:$0xff]  ;;  %v2251_v27 = vld [vmem:[%s2211_s23 + $0x30] sm:$0xff]  ;;  %v3248_v20 = vunpack.c.h.bf16 %v2214_v52 }
  0x5b   : > { %3236 = vst [vmem:[#allocation46_spill] sm:$0xff] %v2176_v61  ;;  %3237 = vst [vmem:[#allocation47_spill] sm:$0xff] %v2180_v5  ;;  %v2197_v16 = vmul.f32 %v2167_v50, %v1953_v37  ;;  %v2201_v23 = vmul.f32 %v2170_v24, %v1955_v38  ;;  %v2205_v47 = vmul.f32 %v2173_v51, %v1957_v39  ;;  %v1114_v30 = vsel %vm470_vm0, %v2180_v5, 0.0  ;;  %v2236_v24 = vld [vmem:[%s2211_s23 + $0x18] sm:$0xff]  ;;  %v2244_v50 = vld [vmem:[%s2211_s23 + $0x20] sm:$0xff]  ;;  %s1262_s23 = sadd.s32 %s1758_s18, %s1467_s9  ;;  %s1666_s18 = sshll.u32 %s1773_s17, 4  ;;  %s1667_s18 = int_to_ptr.vmem [resolvable:$false] %s1666_s18 }
  0x5c   : > { %3238 = vst [vmem:[#allocation48_spill] sm:$0xff] %v2185_v9  ;;  %3239 = vst [vmem:[#allocation49_spill] sm:$0xff] %v2189_v10  ;;  %v2209_v49 = vmul.f32 %v2176_v61, %v1959_v40  ;;  %v1109_v53 = vadd.f32 %v1108_v8, %v2121_v45  ;;  %v1115_v31 = vsel %vm470_vm0, %v2185_v9, 0.0  ;;  %v1117_v12 = vsel %vm470_vm0, %v2189_v10, 0.0  ;;  %s1484_s7 = sshll.u32 %s1262_s23, 9  ;;  %p1669_p9 = scmp.lt.s32.totalorder %s2992_s28, %s1667_s18 }
  0x5d   : > { %3240 = vst [vmem:[#allocation50_spill] sm:$0xff] %v2193_v15  ;;  %3241 = vst [vmem:[#allocation51_spill] sm:$0xff] %v2197_v16  ;;  %v1116_v14 = vadd.f32 %v1115_v31, %v1114_v30  ;;  %v1119_v61 = vsel %vm470_vm0, %v2193_v15, 0.0  ;;  %v1121_v8 = vsel %vm470_vm0, %v2197_v16, 0.0  ;;  %v1123_v51 = vsel %vm470_vm0, %v2201_v23, 0.0  ;;  %s2990_s27 = scalar_lea.hbm %s3081_s2, %s1484_s7 }
  0x5e   : > { %3242 = vst [vmem:[#allocation52_spill] sm:$0xff] %v2201_v23  ;;  %3243 = vst [vmem:[#allocation53_spill] sm:$0xff] %v2205_v47  ;;  %v1110_v21 = vadd.f32 %v1109_v53, %v2125_v46  ;;  %v1125_v30 = vsel %vm470_vm0, %v2205_v47, 0.0  ;;  %v1127_v31 = vsel %vm470_vm0, %v2209_v49, 0.0  ;;  %v3246_v53 = vunpack.c.l.bf16 %v2214_v52 }
  0x5f   : > { %3244 = vst [vmem:[#allocation54_spill] sm:$0xff] %v2209_v49  ;;  %v1118_v62 = vadd.f32 %v1117_v12, %v1116_v14  ;;  %v3247_v11 = vunpack.c.h.bf16 %v2244_v50  ;;  %v3250_v14 = vunpack.c.l.bf16 %v2224_v28  ;;  %v3253_v56 = vunpack.c.h.bf16 %v2224_v28 }
  0x60   : > { %v1111_v25 = vadd.f32 %v1110_v21, %v2130_v48  ;;  %v3113_v21 = vunpack.c.h.bf16 %v2261_v60  ;;  %v3265_v15 = vunpack.c.h.bf16 %v2236_v24  ;;  %vm316_vm2 = vcmask 39936  }
  0x61   : > { %v1120_v59 = vadd.f32 %v1119_v61, %v1118_v62 }
  0x62   : > { %1112 = vadd.xlane.f32.xlu1 %v1111_v25  ;;  %v471_v25 = vsel %vm470_vm0, %v3109_v26, -inf  ;;  %v3252_v26 = vunpack.c.h.bf16 %v2248_v32 }
  0x63   : > { %v1122_v61 = vadd.f32 %v1121_v8, %v1120_v59  ;;  %v3245_v8 = vunpack.c.l.bf16 %v2244_v50  ;;  %v3249_v59 = vunpack.c.l.bf16 %v2248_v32 }
  0x64   : > { %v497_v55 = vmax.f32 %v3253_v56, %v3252_v26  ;;  %v3258_v26 = vunpack.c.h.bf16 %v2251_v27 }
  0x65   : > { %v1124_v12 = vadd.f32 %v1123_v51, %v1122_v61  ;;  %v469_v13 = vmax.f32 %v3246_v53, %v3245_v8  ;;  %v479_v51 = vmax.f32 %v3248_v20, %v3247_v11  ;;  %v480_v61 = vsel %vm470_vm0, %v3113_v21, -inf }
  0x66   : > { %v488_v57 = vmax.f32 %v3250_v14, %v3249_v59  ;;  %v3251_v53 = vunpack.c.l.bf16 %v2267_v58  ;;  %v3256_v21 = vunpack.c.l.bf16 %v2233_v22 }
  0x67   : > { %v1126_v62 = vadd.f32 %v1125_v30, %v1124_v12  ;;  %v472_v11 = vmax.f32 %v469_v13, %v471_v25  ;;  %v481_v20 = vmax.f32 %v479_v51, %v480_v61  ;;  %v498_v30 = vsel %vm470_vm0, %v3254_v54, -inf }
  0x68   : > { %v489_v8 = vsel %vm470_vm0, %v3251_v53, -inf  ;;  %v3255_v12 = vunpack.c.l.bf16 %v2251_v27  ;;  %v499_v47 = vmax.f32 %v497_v55, %v498_v30  ;;  %v3257_v53 = vunpack.c.l.bf16 %v2270_v19 }
  0x69   : > { %v1128_v59 = vadd.f32 %v1127_v31, %v1126_v62  ;;  %v490_v49 = vmax.f32 %v488_v57, %v489_v8  ;;  %v473_v16 = vrot.slane %v472_v11, 4  ;;  %v482_v56 = vrot.slane %v481_v20, 4 }
  0x6a   : > { %v506_v14 = vmax.f32 %v3256_v21, %v3255_v12  ;;  %v507_v23 = vsel %vm470_vm0, %v3257_v53, -inf  ;;  %v3259_v25 = vunpack.c.h.bf16 %v2233_v22  ;;  %v500_v61 = vrot.slane %v499_v47, 4 }
  0x6b   : > { %1129 = vadd.xlane.f32.xlu0 %v1128_v59  ;;  %v491_v51 = vrot.slane %v490_v49, 4  ;;  %v3260_v21 = vunpack.c.h.bf16 %v2270_v19  ;;  %v3261_v55 = vunpack.c.l.bf16 %v2258_v18  ;;  %v3262_v31 = vunpack.c.l.bf16 %v2236_v24 }
  0x6c   : > { %v508_v13 = vmax.f32 %v506_v14, %v507_v23  ;;  %v515_v54 = vmax.f32 %v3259_v25, %v3258_v26  ;;  %v474_v8 = vmax.f32 %v472_v11, %v473_v16  ;;  %v483_v30 = vmax.f32 %v481_v20, %v482_v56 }
  0x6d   : > { %v516_v57 = vsel %vm470_vm0, %v3260_v21, -inf  ;;  %v524_v62 = vmax.f32 %v3262_v31, %v3261_v55  ;;  %v492_v14 = vmax.f32 %v490_v49, %v491_v51  ;;  %v501_v53 = vmax.f32 %v499_v47, %v500_v61 }
  0x6e   : > { %v509_v23 = vrot.slane %v508_v13, 4  ;;  %v517_v12 = vmax.f32 %v515_v54, %v516_v57  ;;  %v3263_v26 = vunpack.c.l.bf16 %v2276_v17  ;;  %v3264_v25 = vunpack.c.h.bf16 %v2258_v18 }
  0x6f   : > { %v475_v10 = vrot.slane %v474_v8, 2  ;;  %v484_v9 = vrot.slane %v483_v30, 2  ;;  %v493_v55 = vrot.slane %v492_v14, 2  ;;  %v502_v16 = vrot.slane %v501_v53, 2 }
  0x70   : > { %v525_v59 = vsel %vm470_vm0, %v3263_v26, -inf  ;;  %v533_v21 = vmax.f32 %v3265_v15, %v3264_v25  ;;  %v510_v5 = vmax.f32 %v508_v13, %v509_v23  ;;  %v518_v63 = vrot.slane %v517_v12, 4 }
  0x71   : > { %v526_v11 = vmax.f32 %v524_v62, %v525_v59  ;;  %v3266_v20 = vunpack.c.h.bf16 %v2276_v17  ;;  %v476_v49 = vmax.f32 %v474_v8, %v475_v10  ;;  %v485_v56 = vmax.f32 %v483_v30, %v484_v9 }
  0x72   : > { %v511_v54 = vrot.slane %v510_v5, 2  ;;  %v519_v51 = vmax.f32 %v517_v12, %v518_v63  ;;  %v494_v61 = vmax.f32 %v492_v14, %v493_v55  ;;  %v503_v57 = vmax.f32 %v501_v53, %v502_v16 }
  0x73   : > { %v534_v47 = vsel %vm470_vm0, %v3266_v20, -inf  ;;  %v527_v31 = vrot.slane %v526_v11, 4  ;;  %v477_v15 = vrot.slane %v476_v49, 1  ;;  %v486_v25 = vrot.slane %v485_v56, 1 }
  0x74   : > { %v535_v26 = vmax.f32 %v533_v21, %v534_v47  ;;  %v512_v7 = vmax.f32 %v510_v5, %v511_v54  ;;  %v520_v13 = vrot.slane %v519_v51, 2  ;;  %v495_v23 = vrot.slane %v494_v61, 1 }
  0x75   : > { %v504_v6 = vrot.slane %v503_v57, 1  ;;  %v528_v4 = vmax.f32 %v526_v11, %v527_v31  ;;  %v478_v59 = vmax.f32 %v476_v49, %v477_v15  ;;  %v487_v9 = vmax.f32 %v485_v56, %v486_v25 }
  0x76   : > { %v536_v62 = vrot.slane %v535_v26, 4  ;;  %v513_v3 = vrot.slane %v512_v7, 1  ;;  %v521_v2 = vmax.f32 %v519_v51, %v520_v13  ;;  %v496_v8 = vmax.f32 %v494_v61, %v495_v23 }
  0x77   : > { %v529_v20 = vrot.slane %v528_v4, 2  ;;  %v505_v63 = vmax.f32 %v503_v57, %v504_v6  ;;  %v3267_v5 = vunpack.c.l.bf16 %v2214_v52  ;;  %v3269_v47 = vunpack.c.h.bf16 %v2214_v52 }
  0x78   : > { %v537_v10 = vmax.f32 %v535_v26, %v536_v62  ;;  %v522_v30 = vrot.slane %v521_v2, 1  ;;  %v514_v12 = vmax.f32 %v512_v7, %v513_v3  ;;  %v3271_v54 = vunpack.c.l.bf16 %v2224_v28 }
  0x79   : > { %v530_v14 = vmax.f32 %v528_v4, %v529_v20  ;;  %v2350_v55 = vsub.f32 %v3267_v5, %v478_v59  ;;  %v2354_v49 = vsub.f32 %v3269_v47, %v487_v9  ;;  %v3273_v6 = vunpack.c.h.bf16 %v2224_v28 }
  0x7a   : > { %v538_v53 = vrot.slane %v537_v10, 2  ;;  %v523_v21 = vmax.f32 %v521_v2, %v522_v30  ;;  %v2358_v56 = vsub.f32 %v3271_v54, %v496_v8  ;;  %v3275_v7 = vunpack.c.l.bf16 %v2233_v22 }
  0x7b   : > { %3268 = vst [vmem:[#allocation55_spill] sm:$0xff] %v2350_v55  ;;  %v531_v16 = vrot.slane %v530_v14, 1  ;;  %3270 = vst [vmem:[#allocation56_spill] sm:$0xff] %v2354_v49  ;;  %v2362_v3 = vsub.f32 %v3273_v6, %v505_v63  ;;  %v3277_v61 = vunpack.c.h.bf16 %v2233_v22  ;;  %v566_v52 = vmul.f32 1.442695, %v2350_v55 }
  0x7c   : > { %v539_v11 = vmax.f32 %v537_v10, %v538_v53  ;;  %3272 = vst [vmem:[#allocation57_spill] sm:$0xff] %v2358_v56  ;;  %v2366_v51 = vsub.f32 %v3275_v7, %v514_v12  ;;  %v3279_v26 = vunpack.c.l.bf16 %v2236_v24  ;;  %v568_v28 = vmul.f32 1.442695, %v2354_v49 }
  0x7d   : > { %3274 = vst [vmem:[#allocation58_spill] sm:$0xff] %v2362_v3  ;;  %v532_v4 = vmax.f32 %v530_v14, %v531_v16  ;;  %v2370_v57 = vsub.f32 %v3277_v61, %v523_v21  ;;  %v570_v25 = vmul.f32 1.442695, %v2358_v56  ;;  %v572_v13 = vmul.f32 1.442695, %v2362_v3 }
  0x7e   : > { %v540_v2 = vrot.slane %v539_v11, 1  ;;  %3276 = vst [vmem:[#allocation59_spill] sm:$0xff] %v2366_v51  ;;  %v3281_v23 = vunpack.c.h.bf16 %v2236_v24  ;;  %v3283_v22 = vunpack.c.l.bf16 %v2244_v50  ;;  %1582 = vpow2.f32 %v566_v52 }
  0x7f   : > { %3278 = vst [vmem:[#allocation60_spill] sm:$0xff] %v2370_v57  ;;  %v2375_v15 = vsub.f32 %v3279_v26, %v532_v4  ;;  %v574_v10 = vmul.f32 1.442695, %v2366_v51  ;;  %v3285_v30 = vunpack.c.h.bf16 %v2244_v50  ;;  %1584 = vpow2.f32 %v568_v28 }
  0x80   : > { %v541_v31 = vmax.f32 %v539_v11, %v540_v2  ;;  %v2386_v20 = vsub.f32 %v3283_v22, %v478_v59  ;;  %v576_v53 = vmul.f32 1.442695, %v2370_v57  ;;  %v3287_v5 = vunpack.c.l.bf16 %v2248_v32 }
  0x81   : > { %3280 = vst [vmem:[#allocation61_spill] sm:$0xff] %v2375_v15  ;;  %v2391_v14 = vsub.f32 %v3285_v30, %v487_v9  ;;  %1586 = vpow2.f32 %v570_v25  ;;  %v578_v24 = vmul.f32 1.442695, %v2375_v15  ;;  %v3289_v11 = vunpack.c.h.bf16 %v2248_v32 }
  0x82   : > { %v2382_v62 = vsub.f32 %v3281_v23, %v541_v31  ;;  %3284 = vst [vmem:[#allocation63_spill] sm:$0xff] %v2386_v20  ;;  %v2396_v16 = vsub.f32 %v3287_v5, %v496_v8  ;;  %1588 = vpow2.f32 %v572_v13  ;;  %v3291_v50 = vunpack.c.l.bf16 %v2251_v27 }
  0x83   : > { %3286 = vst [vmem:[#allocation64_spill] sm:$0xff] %v2391_v14  ;;  %v2401_v47 = vsub.f32 %v3289_v11, %v505_v63  ;;  %1590 = vpow2.f32 %v574_v10  ;;  %v582_v2 = vmul.f32 1.442695, %v2386_v20  ;;  %v3293_v7 = vunpack.c.h.bf16 %v2251_v27 }
  0x84   : > { %3282 = vst [vmem:[#allocation62_spill] sm:$0xff] %v2382_v62  ;;  %3288 = vst [vmem:[#allocation65_spill] sm:$0xff] %v2396_v16  ;;  %v580_v54 = vmul.f32 1.442695, %v2382_v62  ;;  %v2406_v6 = vsub.f32 %v3291_v50, %v514_v12  ;;  %1592 = vpow2.f32 %v576_v53  ;;  %v584_v52 = vmul.f32 1.442695, %v2391_v14 }
  0x85   : > { %3290 = vst [vmem:[#allocation66_spill] sm:$0xff] %v2401_v47  ;;  %v2411_v61 = vsub.f32 %v3293_v7, %v523_v21  ;;  %v3295_v32 = vunpack.c.l.bf16 %v2258_v18  ;;  %1594 = vpow2.f32 %v578_v24  ;;  %v586_v28 = vmul.f32 1.442695, %v2396_v16 }
  0x86   : > { %3292 = vst [vmem:[#allocation67_spill] sm:$0xff] %v2406_v6  ;;  %v3297_v25 = vunpack.c.h.bf16 %v2258_v18  ;;  %1596 = vpow2.f32 %v580_v54  ;;  %v588_v23 = vmul.f32 1.442695, %v2401_v47  ;;  %v3299_v27 = vunpack.c.l.bf16 %v2261_v60 }
  0x87   : > { %3294 = vst [vmem:[#allocation68_spill] sm:$0xff] %v2411_v61  ;;  %v2416_v26 = vsub.f32 %v3295_v32, %v532_v4  ;;  %1598 = vpow2.f32 %v582_v2  ;;  %v590_v10 = vmul.f32 1.442695, %v2406_v6  ;;  %v3301_v30 = vunpack.c.h.bf16 %v2261_v60 }
  0x88   : > { %v2421_v13 = vsub.f32 %v3297_v25, %v541_v31  ;;  %v2426_v22 = vsub.f32 %v3299_v27, %v478_v59  ;;  %1600 = vpow2.f32 %v584_v52  ;;  %v592_v5 = vmul.f32 1.442695, %v2411_v61 }
  0x89   : > { %3296 = vst [vmem:[#allocation69_spill] sm:$0xff] %v2416_v26  ;;  %v2431_v53 = vsub.f32 %v3301_v30, %v487_v9  ;;  %v3303_v18 = vunpack.c.l.bf16 %v2267_v58  ;;  %1602 = vpow2.f32 %v586_v28  ;;  %v594_v11 = vmul.f32 1.442695, %v2416_v26 }
  0x8a   : > { %3298 = vst [vmem:[#allocation70_spill] sm:$0xff] %v2421_v13  ;;  %3300 = vst [vmem:[#allocation71_spill] sm:$0xff] %v2426_v22  ;;  %v3305_v59 = vunpack.c.h.bf16 %v2267_v58  ;;  %1604 = vpow2.f32 %v588_v23  ;;  %v596_v50 = vmul.f32 1.442695, %v2421_v13  ;;  %v3307_v60 = vunpack.c.l.bf16 %v2270_v19 }
  0x8b   : > { %3302 = vst [vmem:[#allocation72_spill] sm:$0xff] %v2431_v53  ;;  %v2436_v24 = vsub.f32 %v3303_v18, %v496_v8  ;;  %1606 = vpow2.f32 %v590_v10  ;;  %v598_v2 = vmul.f32 1.442695, %v2426_v22  ;;  %v2449_v7 = vpop.eup %1582  ;;  %v3309_v8 = vunpack.c.h.bf16 %v2270_v19 }
  0x8c   : > { %v2441_v54 = vsub.f32 %v3305_v59, %v505_v63  ;;  %v2446_v9 = vsub.f32 %v3307_v60, %v514_v12  ;;  %1608 = vpow2.f32 %v592_v5  ;;  %v600_v58 = vmul.f32 1.442695, %v2431_v53  ;;  %v2456_v63 = vpop.eup %1584 }
  0x8d   : > { %3304 = vst [vmem:[#allocation73_spill] sm:$0xff] %v2436_v24  ;;  %v2453_v52 = vsub.f32 %v3309_v8, %v523_v21  ;;  %v3311_v32 = vunpack.c.l.bf16 %v2276_v17  ;;  %1610 = vpow2.f32 %v594_v11  ;;  %v602_v12 = vmul.f32 1.442695, %v2436_v24 }
  0x8e   : > { %3306 = vst [vmem:[#allocation74_spill] sm:$0xff] %v2441_v54  ;;  %3308 = vst [vmem:[#allocation75_spill] sm:$0xff] %v2446_v9  ;;  %v2463_v25 = vpop.eup %1586  ;;  %v3313_v23 = vunpack.c.h.bf16 %v2276_v17  ;;  %1612 = vpow2.f32 %v596_v50  ;;  %v604_v19 = vmul.f32 1.442695, %v2441_v54  ;;  %v606_v10 = vmul.f32 1.442695, %v2446_v9 }
  0x8f   : > { %3310 = vst [vmem:[#allocation76_spill] sm:$0xff] %v2453_v52  ;;  %v2460_v28 = vsub.f32 %v3311_v32, %v532_v4  ;;  %v2470_v21 = vpop.eup %1588  ;;  %1614 = vpow2.f32 %v598_v2  ;;  %v608_v4 = vmul.f32 1.442695, %v2453_v52 }
  0x90   : > { %v2467_v27 = vsub.f32 %v3313_v23, %v541_v31  ;;  %v2473_v30 = vpop.eup %1590  ;;  %1616 = vpow2.f32 %v600_v58 }
  0x91   : > { %3312 = vst [vmem:[#allocation77_spill] sm:$0xff] %v2460_v28  ;;  %v2476_v5 = vpop.eup %1592  ;;  %1618 = vpow2.f32 %v602_v12  ;;  %v610_v17 = vmul.f32 1.442695, %v2460_v28 }
  0x92   : > { %3314 = vst [vmem:[#allocation78_spill] sm:$0xff] %v2467_v27  ;;  %v2479_v31 = vpop.eup %1594  ;;  %1620 = vpow2.f32 %v604_v19  ;;  %v612_v18 = vmul.f32 1.442695, %v2467_v27 }
  0x93   : > { %v2482_v11 = vpop.eup %1596  ;;  %1622 = vpow2.f32 %v606_v10 }
  0x94   : > { %3315 = vst [vmem:[#allocation79_spill] sm:$0xff] %v2482_v11  ;;  %v2484_v59 = vpop.eup %1598  ;;  %1624 = vpow2.f32 %v608_v4 }
  0x95   : > { %v2486_v50 = vpop.eup %1600  ;;  %1626 = vpow2.f32 %v610_v17  ;;  %v614_v12 = vadd.f32 %v2484_v59, %v2449_v7 }
  0x96   : > { %v2488_v60 = vpop.eup %1602  ;;  %1628 = vpow2.f32 %v612_v18  ;;  %v623_v19 = vadd.f32 %v2486_v50, %v2456_v63 }
  0x97   : > { %v2490_v2 = vpop.eup %1604  ;;  %v632_v4 = vadd.f32 %v2488_v60, %v2463_v25 }
  0x98   : > { %v2492_v8 = vpop.eup %1606  ;;  %v641_v27 = vadd.f32 %v2490_v2, %v2470_v21 }
  0x99   : > { %v2494_v58 = vpop.eup %1608  ;;  %v650_v54 = vadd.f32 %v2492_v8, %v2473_v30 }
  0x9a   : > { %v2496_v32 = vpop.eup %1610  ;;  %v659_v13 = vadd.f32 %v2494_v58, %v2476_v5 }
  0x9b   : > { %v2500_v23 = vpop.eup %1612 }
  0x9c   : > { %v2504_v10 = vpop.eup %1614  ;;  %v677_v14 = vadd.f32 %v2500_v23, %v2482_v11 }
  0x9d   : > { %v2508_v17 = vpop.eup %1616  ;;  %v615_v18 = vsel %vm470_vm0, %v2504_v10, 0.0 }
  0x9e   : > { %v2514_v28 = vpop.eup %1618  ;;  %v616_v52 = vadd.f32 %v615_v18, %v614_v12  ;;  %v624_v9 = vsel %vm470_vm0, %v2508_v17, 0.0  ;;  %v668_v18 = vadd.f32 %v2496_v32, %v2479_v31 }
  0x9f   : > { %3316 = vst [vmem:[#allocation80_spill] sm:$0xff] %v2514_v28  ;;  %v2520_v24 = vpop.eup %1620  ;;  %v625_v53 = vadd.f32 %v624_v9, %v623_v19  ;;  %v633_v22 = vsel %vm470_vm0, %v2514_v28, 0.0 }
  0xa0   : > { %3317 = vst [vmem:[#allocation81_spill] sm:$0xff] %v2520_v24  ;;  %v2526_v26 = vpop.eup %1622  ;;  %v617_v61 = vrot.slane %v616_v52, 4  ;;  %v634_v6 = vadd.f32 %v633_v22, %v632_v4  ;;  %v642_v12 = vsel %vm470_vm0, %v2520_v24, 0.0 }
  0xa1   : > { %3318 = vst [vmem:[#allocation82_spill] sm:$0xff] %v2526_v26  ;;  %v2532_v47 = vpop.eup %1624  ;;  %v626_v16 = vrot.slane %v625_v53, 4  ;;  %v643_v9 = vadd.f32 %v642_v12, %v641_v27  ;;  %v651_v19 = vsel %vm470_vm0, %v2526_v26, 0.0 }
  0xa2   : > { %3319 = vst [vmem:[#allocation83_spill] sm:$0xff] %v2532_v47  ;;  %v2538_v20 = vpop.eup %1626  ;;  %v618_v28 = vadd.f32 %v617_v61, %v616_v52  ;;  %v635_v22 = vrot.slane %v634_v6, 4  ;;  %v652_v4 = vadd.f32 %v651_v19, %v650_v54  ;;  %v660_v24 = vsel %vm470_vm0, %v2532_v47, 0.0 }
  0xa3   : > { %3320 = vst [vmem:[#allocation84_spill] sm:$0xff] %v2538_v20  ;;  %v2542_v62 = vpop.eup %1628  ;;  %v627_v15 = vadd.f32 %v626_v16, %v625_v53  ;;  %v644_v57 = vrot.slane %v643_v9, 4  ;;  %v661_v51 = vadd.f32 %v660_v24, %v659_v13  ;;  %v669_v27 = vsel %vm470_vm0, %v2538_v20, 0.0 }
  0xa4   : > { %3321 = vst [vmem:[#allocation85_spill] sm:$0xff] %v2542_v62  ;;  %v619_v12 = vrot.slane %v618_v28, 2  ;;  %v636_v26 = vadd.f32 %v635_v22, %v634_v6  ;;  %v653_v3 = vrot.slane %v652_v4, 4  ;;  %v670_v56 = vadd.f32 %v669_v27, %v668_v18 }
  0xa5   : > { %v628_v49 = vrot.slane %v627_v15, 2  ;;  %v645_v55 = vadd.f32 %v644_v57, %v643_v9  ;;  %v662_v61 = vrot.slane %v661_v51, 4  ;;  %v678_v54 = vsel %vm470_vm0, %v2542_v62, 0.0 }
  0xa6   : > { %v620_v52 = vadd.f32 %v619_v12, %v618_v28  ;;  %v637_v19 = vrot.slane %v636_v26, 2  ;;  %v654_v47 = vadd.f32 %v653_v3, %v652_v4  ;;  %v671_v1 = vrot.slane %v670_v56, 4 }
  0xa7   : > { %v629_v16 = vadd.f32 %v628_v49, %v627_v15  ;;  %v646_v53 = vrot.slane %v645_v55, 2  ;;  %v663_v13 = vadd.f32 %v662_v61, %v661_v51  ;;  %v679_v24 = vadd.f32 %v678_v54, %v677_v14 }
  0xa8   : > { %v621_v0 = vrot.slane %v620_v52, 1  ;;  %v638_v20 = vadd.f32 %v637_v19, %v636_v26  ;;  %v655_v48 = vrot.slane %v654_v47, 2  ;;  %v672_v6 = vadd.f32 %v671_v1, %v670_v56 }
  0xa9   : > { %v630_v22 = vrot.slane %v629_v16, 1  ;;  %v647_v18 = vadd.f32 %v646_v53, %v645_v55  ;;  %v664_v27 = vrot.slane %v663_v13, 2  ;;  %v680_v57 = vrot.slane %v679_v24, 4 }
  0xaa   : > { %v622_v9 = vadd.f32 %v621_v0, %v620_v52  ;;  %v639_v11 = vrot.slane %v638_v20, 1  ;;  %v656_v40 = vadd.f32 %v655_v48, %v654_v47  ;;  %v673_v62 = vrot.slane %v672_v6, 2 }
  0xab   : > { %v631_v28 = vadd.f32 %v630_v22, %v629_v16  ;;  %v648_v12 = vrot.slane %v647_v18, 1  ;;  %v665_v3 = vadd.f32 %v664_v27, %v663_v13  ;;  %v681_v4 = vadd.f32 %v680_v57, %v679_v24 }
  0xac   : > { %v640_v49 = vadd.f32 %v639_v11, %v638_v20  ;;  %v657_v15 = vrot.slane %v656_v40, 1  ;;  %v674_v51 = vadd.f32 %v673_v62, %v672_v6  ;;  %1630 = vrcp.f32 %v622_v9 }
  0xad   : > { %v649_v14 = vadd.f32 %v648_v12, %v647_v18  ;;  %v666_v26 = vrot.slane %v665_v3, 1  ;;  %v682_v61 = vrot.slane %v681_v4, 2  ;;  %1632 = vrcp.f32 %v631_v28 }
  0xae   : > { %v658_v1 = vadd.f32 %v657_v15, %v656_v40  ;;  %v675_v55 = vrot.slane %v674_v51, 1  ;;  %1634 = vrcp.f32 %v640_v49 }
  0xaf   : > { %v667_v56 = vadd.f32 %v666_v26, %v665_v3  ;;  %v683_v0 = vadd.f32 %v682_v61, %v681_v4  ;;  %1636 = vrcp.f32 %v649_v14 }
  0xb0   : > { %v676_v48 = vadd.f32 %v675_v55, %v674_v51  ;;  %1638 = vrcp.f32 %v658_v1 }
  0xb1   : > { %v684_v47 = vrot.slane %v683_v0, 1  ;;  %1640 = vrcp.f32 %v667_v56 }
  0xb2   : > { %1642 = vrcp.f32 %v676_v48 }
  0xb3   : > { %v685_v54 = vadd.f32 %v684_v47, %v683_v0  ;;  %1644 = vlog2.f32 %v622_v9 }
  0xb4   : > { %1646 = vlog2.f32 %v631_v28 }
  0xb5   : > { %1648 = vrcp.f32 %v685_v54 }
  0xb6   : > { %1650 = vlog2.f32 %v640_v49 }
  0xb7   : > { %1652 = vlog2.f32 %v649_v14 }
  0xb8   : > { %1654 = vlog2.f32 %v658_v1 }
  0xb9   : > { %v1631_v62 = vpop.eup %1630  ;;  %1656 = vlog2.f32 %v667_v56 }
  0xba   : > { %v1633_v40 = vpop.eup %1632  ;;  %v702_v20 = vmul.f32 %v1631_v62, %v2484_v59  ;;  %v694_v11 = vmul.f32 %v1631_v62, %v2449_v7  ;;  %1658 = vlog2.f32 %v676_v48  ;;  %v2551_v52 = vmul.f32 %v1631_v62, %v2504_v10 }
  0xbb   : > { %v2553_v19 = vpop.eup %1634  ;;  %v703_v16 = vmul.f32 %v1633_v40, %v2486_v50  ;;  %v695_v53 = vmul.f32 %v1633_v40, %v2456_v63  ;;  %1660 = vlog2.f32 %v685_v54  ;;  %v2558_v13 = vmul.f32 %v1633_v40, %v2508_v17 }
  0xbc   : > { %v2560_v24 = vpop.eup %1636  ;;  %v704_v7 = vmul.f32 %v2553_v19, %v2488_v60  ;;  %v2565_v59 = vmul.f32 %v1945_v33, %v702_v20  ;;  %v696_v10 = vmul.f32 %v2553_v19, %v2463_v25  ;;  %v2570_v6 = vmul.f32 %v1945_v33, %v694_v11 }
  0xbd   : > { %v2572_v50 = vpop.eup %1638  ;;  %v705_v63 = vmul.f32 %v2560_v24, %v2490_v2  ;;  %v2577_v17 = vmul.f32 %v1947_v34, %v703_v16  ;;  %v697_v60 = vmul.f32 %v2560_v24, %v2470_v21  ;;  %v2582_v22 = vmul.f32 %v1947_v34, %v695_v53 }
  0xbe   : > { %3322 = vst [vmem:[#allocation86_spill] sm:$0xff] %v2565_v59  ;;  %v2584_v18 = vpop.eup %1640  ;;  %v706_v25 = vmul.f32 %v2572_v50, %v2492_v8  ;;  %v2590_v27 = vmul.f32 %v1949_v35, %v704_v7  ;;  %v855_v2 = vsub.f32 %v2101_v29, %v2565_v59  ;;  %v698_v57 = vmul.f32 %v2572_v50, %v2473_v30 }
  0xbf   : > { %3323 = vst [vmem:[#allocation87_spill] sm:$0xff] %v2577_v17  ;;  %v2596_v21 = vpop.eup %1642  ;;  %v707_v9 = vmul.f32 %v2584_v18, %v2494_v58  ;;  %v2601_v28 = vmul.f32 %v1951_v36, %v705_v63  ;;  %v856_v8 = vsub.f32 %v2105_v41, %v2577_v17  ;;  %v1070_v12 = vadd.f32 %v2577_v17, %v2565_v59  ;;  %v3329_v63 = vld [vmem:[#allocation8_spill] sm:$0xff] }
  0xc0   : > { %3324 = vst [vmem:[#allocation88_spill] sm:$0xff] %v2590_v27  ;;  %v2607_v3 = vpop.eup %1644  ;;  %v708_v4 = vmul.f32 %v2596_v21, %v2496_v32  ;;  %v2612_v30 = vmul.f32 %v1953_v37, %v706_v25  ;;  %v857_v58 = vsub.f32 %v2109_v42, %v2590_v27  ;;  %v879_v49 = vand.u32 2147483647, %v855_v2 }
  0xc1   : > { %3325 = vst [vmem:[#allocation89_spill] sm:$0xff] %v2601_v28  ;;  %v2616_v15 = vpop.eup %1646  ;;  %v2621_v51 = vmul.f32 %v1955_v38, %v707_v9  ;;  %v858_v14 = vsub.f32 %v2113_v43, %v2601_v28  ;;  %v880_v26 = vand.u32 2147483647, %v856_v8  ;;  %v1071_v32 = vadd.f32 %v1070_v12, %v2590_v27  ;;  %v3339_v43 = vld [vmem:[#allocation17_spill] sm:$0xff] }
  0xc2   : > { %3326 = vst [vmem:[#allocation90_spill] sm:$0xff] %v2612_v30  ;;  %v2626_v61 = vpop.eup %1648  ;;  %v2629_v1 = vmul.f32 %v1957_v39, %v708_v4  ;;  %v859_v55 = vsub.f32 %v2117_v44, %v2612_v30  ;;  %v881_v56 = vand.u32 2147483647, %v857_v58  ;;  %v699_v0 = vmul.f32 %v2584_v18, %v2476_v5  ;;  %v3330_v4 = vld [vmem:[#allocation79_spill] sm:$0xff] }
  0xc3   : > { %3327 = vst [vmem:[#allocation91_spill] sm:$0xff] %v2621_v51  ;;  %v1651_v48 = vpop.eup %1650  ;;  %v709_v47 = vmul.f32 %v2626_v61, %v2500_v23  ;;  %v860_v54 = vsub.f32 %v2121_v45, %v2621_v51  ;;  %v882_v62 = vand.u32 2147483647, %v858_v14  ;;  %v1072_v40 = vadd.f32 %v1071_v32, %v2601_v28 }
  0xc4   : > { %3328 = vst [vmem:[#allocation92_spill] sm:$0xff] %v2629_v1  ;;  %v1653_v20 = vpop.eup %1652  ;;  %v861_v11 = vsub.f32 %v2125_v46, %v2629_v1  ;;  %v883_v16 = vand.u32 2147483647, %v859_v55  ;;  %v1476_v53 = vpack.c.bf16 %v880_v26, %v879_v49  ;;  %v700_v7 = vmul.f32 %v2596_v21, %v2479_v31  ;;  %v3331_v26 = vld [vmem:[#allocation38_spill] sm:$0xff] }
  0xc5   : > { %v1655_v5 = vpop.eup %1654  ;;  %v2645_v25 = vmul.f32 %v3329_v63, %v709_v47  ;;  %v884_v23 = vand.u32 2147483647, %v860_v54  ;;  %v1477_v2 = vpack.c.bf16 %v882_v62, %v881_v56  ;;  %v1073_v9 = vadd.f32 %v1072_v40, %v2612_v30  ;;  %v3332_v40 = vld [vmem:[#allocation18_spill] sm:$0xff] }
  0xc6   : > { %v1657_v8 = vpop.eup %1656  ;;  %v885_v12 = vand.u32 2147483647, %v861_v11  ;;  %979 = vst [vmem:[%s2648_s8 + $0x20] sm:$0xff] %v1476_v53  ;;  %v701_v58 = vmul.f32 %v2626_v61, %v3330_v4  ;;  %v2654_v31 = vmul.f32 %v1949_v35, %v696_v10  ;;  %v2657_v49 = vmul.f32 %v1951_v36, %v697_v60  ;;  %v3336_v4 = vld [vmem:[#allocation22_spill] sm:$0xff] }
  0xc7   : > { %v1659_v14 = vpop.eup %1658  ;;  %v862_v32 = vsub.f32 %v3331_v26, %v2645_v25  ;;  %v1478_v55 = vpack.c.bf16 %v884_v23, %v883_v16  ;;  %980 = vst [vmem:[%s2648_s8 + $0x28] sm:$0xff] %v1477_v2  ;;  %v1074_v56 = vadd.f32 %v1073_v9, %v2621_v51  ;;  %v2664_v47 = vmul.f32 %v1953_v37, %v698_v57  ;;  %v3333_v57 = vld [vmem:[#allocation19_spill] sm:$0xff] }
  0xc8   : > { %v1661_v54 = vpop.eup %1660  ;;  %v2667_v62 = vmul.f32 %v1955_v38, %v699_v0  ;;  %v2670_v10 = vmul.f32 %v1957_v39, %v700_v7  ;;  %v2673_v60 = vmul.f32 %v3329_v63, %v701_v58  ;;  %v848_v11 = vsub.f32 %v3332_v40, %v2582_v22  ;;  %v3334_v0 = vld [vmem:[#allocation20_spill] sm:$0xff]  ;;  %v3335_v7 = vld [vmem:[#allocation21_spill] sm:$0xff]  ;;  %v3337_v51 = vld [vmem:[#allocation23_spill] sm:$0xff] }
  0xc9   : > { %v886_v16 = vand.u32 2147483647, %v862_v32  ;;  %981 = vst [vmem:[%s2648_s8 + $0x30] sm:$0xff] %v1478_v55  ;;  %v1075_v53 = vadd.f32 %v1074_v56, %v2629_v1  ;;  %v849_v23 = vsub.f32 %v3333_v57, %v2654_v31  ;;  %v850_v2 = vsub.f32 %v3334_v0, %v2657_v49  ;;  %v3338_v32 = vld [vmem:[#allocation24_spill] sm:$0xff] }
  0xca   : > { %v851_v9 = vsub.f32 %v3335_v7, %v2664_v47  ;;  %v852_v58 = vsub.f32 %v3336_v4, %v2667_v62  ;;  %v853_v30 = vsub.f32 %v3337_v51, %v2670_v10  ;;  %v854_v55 = vsub.f32 %v3338_v32, %v2673_v60 }
  0xcb   : > { %v1479_v28 = vpack.c.bf16 %v886_v16, %v885_v12  ;;  %v1076_v56 = vadd.f32 %v1075_v53, %v2645_v25  ;;  %v872_v1 = vand.u32 2147483647, %v848_v11  ;;  %v873_v27 = vand.u32 2147483647, %v849_v23 }
  0xcc   : > { %v874_v17 = vand.u32 2147483647, %v850_v2  ;;  %v875_v59 = vand.u32 2147483647, %v851_v9  ;;  %v876_v26 = vand.u32 2147483647, %v852_v58  ;;  %v1061_v46 = vadd.f32 %v2582_v22, %v2570_v6 }
  0xcd   : > { %982 = vst [vmem:[%s2648_s8 + $0x38] sm:$0xff] %v1479_v28  ;;  %1077 = vadd.xlane.f32.xlu0 %v1076_v56  ;;  %v877_v45 = vand.u32 2147483647, %v853_v30  ;;  %v878_v44 = vand.u32 2147483647, %v854_v55  ;;  %v847_v42 = vsub.f32 %v3339_v43, %v2570_v6  ;;  %v3344_v58 = vld [vmem:[#allocation59_spill] sm:$0xff] }
  0xce   : > { %v2698_v12 = vmul.f32 0.6931472, %v2607_v3  ;;  %v1473_v11 = vpack.c.bf16 %v874_v17, %v873_v27  ;;  %v1474_v16 = vpack.c.bf16 %v876_v26, %v875_v59  ;;  %v1062_v53 = vadd.f32 %v1061_v46, %v2654_v31  ;;  %v3343_v26 = vld [vmem:[#allocation58_spill] sm:$0xff]  ;;  %v3346_v56 = vld [vmem:[#allocation61_spill] sm:$0xff] }
  0xcf   : > { %v2702_v23 = vmul.f32 0.6931472, %v2616_v15  ;;  %v1475_v2 = vpack.c.bf16 %v878_v44, %v877_v45  ;;  %v871_v28 = vand.u32 2147483647, %v847_v42  ;;  %v2704_v9 = vmul.f32 0.6931472, %v1651_v48 }
  0xd0   : > { %v2706_v30 = vmul.f32 0.6931472, %v1653_v20  ;;  %976 = vst [vmem:[%s2648_s8 + $0x8] sm:$0xff] %v1473_v11  ;;  %977 = vst [vmem:[%s2648_s8 + $0x10] sm:$0xff] %v1474_v16  ;;  %v1063_v3 = vadd.f32 %v1062_v53, %v2657_v49  ;;  %v2711_v17 = vmul.f32 0.6931472, %v1655_v5 }
  0xd1   : > { %v2713_v59 = vmul.f32 0.6931472, %v1657_v8  ;;  %v2715_v46 = vmul.f32 0.6931472, %v1659_v14  ;;  %978 = vst [vmem:[%s2648_s8 + $0x18] sm:$0xff] %v1475_v2  ;;  %v1472_v42 = vpack.c.bf16 %v872_v1, %v871_v28  ;;  %v3340_v45 = vld [vmem:[#allocation55_spill] sm:$0xff] }
  0xd2   : > { %v2718_v44 = vmul.f32 0.6931472, %v1661_v54  ;;  %v734_v27 = vsub.f32 %v2698_v12, %v3340_v45  ;;  %v3341_v15 = vld [vmem:[#allocation56_spill] sm:$0xff]  ;;  %v1064_v20 = vadd.f32 %v1063_v3, %v2664_v47  ;;  %v3342_v5 = vld [vmem:[#allocation57_spill] sm:$0xff]  ;;  %v737_v14 = vsub.f32 %v2706_v30, %v3343_v26  ;;  %v3347_v16 = vld [vmem:[#allocation62_spill] sm:$0xff] }
  0xd3   : > { %v735_v48 = vsub.f32 %v2702_v23, %v3341_v15  ;;  %v736_v8 = vsub.f32 %v2704_v9, %v3342_v5  ;;  %v738_v55 = vsub.f32 %v2711_v17, %v3344_v58  ;;  %975 = vst [vmem:[%s2648_s8] sm:$0xff] %v1472_v42  ;;  %v3345_v1 = vld [vmem:[#allocation60_spill] sm:$0xff]  ;;  %v740_v11 = vsub.f32 %v2715_v46, %v3346_v56 }
  0xd4   : > { %v739_v54 = vsub.f32 %v2713_v59, %v3345_v1  ;;  %v741_v53 = vsub.f32 %v2718_v44, %v3347_v16  ;;  %v1002_v2 = vmul.f32 %v3339_v43, %v734_v27  ;;  %v1065_v28 = vadd.f32 %v1064_v20, %v2667_v62  ;;  %v3348_v43 = vld [vmem:[#allocation80_spill] sm:$0xff]  ;;  %v3349_v20 = vld [vmem:[#allocation81_spill] sm:$0xff]  ;;  %v3360_v16 = vld [vmem:[#allocation51_spill] sm:$0xff] }
  0xd5   : > { %v1003_v3 = vmul.f32 %v3332_v40, %v735_v48  ;;  %v1004_v45 = vmul.f32 %v3333_v57, %v736_v8  ;;  %v1005_v15 = vmul.f32 %v3334_v0, %v737_v14  ;;  %v1006_v42 = vmul.f32 %v3335_v7, %v738_v55  ;;  %v3350_v57 = vld [vmem:[#allocation82_spill] sm:$0xff]  ;;  %v3351_v48 = vld [vmem:[#allocation83_spill] sm:$0xff]  ;;  %v3353_v8 = vld [vmem:[#allocation85_spill] sm:$0xff] }
  0xd6   : > { %v1007_v5 = vmul.f32 %v3336_v4, %v739_v54  ;;  %v1008_v26 = vmul.f32 %v3337_v51, %v740_v11  ;;  %v1009_v58 = vmul.f32 %v3338_v32, %v741_v53  ;;  %v1066_v1 = vadd.f32 %v1065_v28, %v2670_v10  ;;  %v3352_v4 = vld [vmem:[#allocation84_spill] sm:$0xff] }
  0xd7   : > { %v1026_v56 = vadd.f32 %v1003_v3, %v1002_v2  ;;  %v712_v27 = vmul.f32 %v2553_v19, %v3348_v43  ;;  %v713_v40 = vmul.f32 %v2560_v24, %v3349_v20  ;;  %v714_v0 = vmul.f32 %v2572_v50, %v3350_v57  ;;  %v3363_v3 = vld [vmem:[#allocation52_spill] sm:$0xff] }
  0xd8   : > { %v715_v7 = vmul.f32 %v2584_v18, %v3351_v48  ;;  %v716_v51 = vmul.f32 %v2596_v21, %v3352_v4  ;;  %v717_v32 = vmul.f32 %v2626_v61, %v3353_v8  ;;  %v1067_v14 = vadd.f32 %v1066_v1, %v2673_v60  ;;  %v996_v48 = vld [vmem:[%s2648_s8 + $0x50] sm:$0x11] }
  0xd9   : > { %v1027_v55 = vadd.f32 %v1026_v56, %v1004_v45  ;;  %v2763_v19 = vmul.f32 %v1945_v33, %v2551_v52  ;;  %v2767_v24 = vmul.f32 %v1947_v34, %v2558_v13  ;;  %v2770_v50 = vmul.f32 %v1949_v35, %v712_v27  ;;  %v3354_v35 = vld [vmem:[#allocation47_spill] sm:$0xff]  ;;  %v3365_v56 = vld [vmem:[#allocation54_spill] sm:$0xff] }
  0xda   : > { %v2773_v18 = vmul.f32 %v1951_v36, %v713_v40  ;;  %v2776_v21 = vmul.f32 %v1953_v37, %v714_v0  ;;  %v2779_v61 = vmul.f32 %v1955_v38, %v715_v7  ;;  %1068 = vadd.xlane.f32.xlu1 %v1067_v14  ;;  %v2782_v52 = vmul.f32 %v1957_v39, %v716_v51  ;;  %v3357_v38 = vld [vmem:[#allocation48_spill] sm:$0xff]  ;;  %v3358_v39 = vld [vmem:[#allocation49_spill] sm:$0xff]  ;;  %v990_v27 = vld [vmem:[%s2648_s8 + $0x40] sm:$0x11] }
  0xdb   : > { %v1028_v33 = vadd.f32 %v1027_v55, %v1005_v15  ;;  %v2785_v34 = vmul.f32 %v3329_v63, %v717_v32  ;;  %v863_v36 = vsub.f32 %v3354_v35, %v2763_v19  ;;  %v864_v13 = vsub.f32 %v3357_v38, %v2767_v24  ;;  %v3359_v63 = vld [vmem:[#allocation50_spill] sm:$0xff]  ;;  %v3364_v15 = vld [vmem:[#allocation53_spill] sm:$0xff]  ;;  %v993_v0 = vld [vmem:[%s2648_s8 + $0x48] sm:$0x11] }
  0xdc   : > { %v865_v54 = vsub.f32 %v3358_v39, %v2770_v50  ;;  %v866_v11 = vsub.f32 %v3359_v63, %v2773_v18  ;;  %v867_v53 = vsub.f32 %v3360_v16, %v2776_v21  ;;  %v868_v45 = vsub.f32 %v3363_v3, %v2779_v61  ;;  %v3366_v7 = vld [vmem:[#allocation63_spill] sm:$0xff] }
  0xdd   : > { %v1029_v28 = vadd.f32 %v1028_v33, %v1006_v42  ;;  %v869_v1 = vsub.f32 %v3364_v15, %v2782_v52  ;;  %v870_v43 = vsub.f32 %v3365_v56, %v2785_v34  ;;  %v887_v20 = vand.u32 2147483647, %v863_v36 }
  0xde   : > { %v888_v40 = vand.u32 2147483647, %v864_v13  ;;  %v889_v57 = vand.u32 2147483647, %v865_v54  ;;  %v742_v4 = vsub.f32 %v2698_v12, %v3366_v7  ;;  %v890_v51 = vand.u32 2147483647, %v866_v11 }
  0xdf   : > { %v1030_v42 = vadd.f32 %v1029_v28, %v1007_v5  ;;  %v891_v8 = vand.u32 2147483647, %v867_v53  ;;  %v892_v32 = vand.u32 2147483647, %v868_v45  ;;  %v893_v55 = vand.u32 2147483647, %v869_v1 }
  0xe0   : > { %v894_v33 = vand.u32 2147483647, %v870_v43  ;;  %v1480_v36 = vpack.c.bf16 %v888_v40, %v887_v20  ;;  %v1079_v13 = vsel %vm470_vm0, %v2763_v19, 0.0  ;;  %v1481_v54 = vpack.c.bf16 %v890_v51, %v889_v57  ;;  %v999_v53 = vld [vmem:[%s2648_s8 + $0x58] sm:$0x11]  ;;  %v3369_v7 = vld [vmem:[#allocation64_spill] sm:$0xff] }
  0xe1   : > { %v1031_v5 = vadd.f32 %v1030_v42, %v1008_v26  ;;  %v1482_v11 = vpack.c.bf16 %v892_v32, %v891_v8  ;;  %v1080_v37 = vsel %vm470_vm0, %v2767_v24, 0.0  ;;  %v1082_v1 = vsel %vm470_vm0, %v2770_v50, 0.0  ;;  %v3370_v42 = vld [vmem:[#allocation65_spill] sm:$0xff]  ;;  %v3371_v32 = vld [vmem:[#allocation66_spill] sm:$0xff] }
  0xe2   : > { %v1483_v2 = vpack.c.bf16 %v894_v33, %v893_v55  ;;  %v991_v28 = vsel %vm2824_vm1, %v1480_v36, %v990_v27  ;;  %v1081_v45 = vadd.f32 %v1080_v37, %v1079_v13  ;;  %v994_v26 = vsel %vm2824_vm1, %v1481_v54, %v993_v0  ;;  %v3372_v55 = vld [vmem:[#allocation67_spill] sm:$0xff]  ;;  %v3373_v36 = vld [vmem:[#allocation68_spill] sm:$0xff] }
  0xe3   : > { %v1032_v43 = vadd.f32 %v1031_v5, %v1009_v58  ;;  %992 = vst [vmem:[%s2648_s8 + $0x40] sm:$0x11] %v991_v28  ;;  %v997_v20 = vsel %vm2824_vm1, %v1482_v11, %v996_v48  ;;  %v1084_v40 = vsel %vm470_vm0, %v2773_v18, 0.0  ;;  %995 = vst [vmem:[%s2648_s8 + $0x48] sm:$0x11] %v994_v26  ;;  %v1086_v58 = vsel %vm470_vm0, %v2776_v21, 0.0 }
  0xe4   : > { %998 = vst [vmem:[%s2648_s8 + $0x50] sm:$0x11] %v997_v20  ;;  %v1000_v27 = vsel %vm2824_vm1, %v1483_v2, %v999_v53  ;;  %v1083_v57 = vadd.f32 %v1082_v1, %v1081_v45  ;;  %v1088_v0 = vsel %vm470_vm0, %v2779_v61, 0.0  ;;  %v743_v48 = vsub.f32 %v2702_v23, %v3369_v7  ;;  %v3374_v2 = vld [vmem:[#allocation69_spill] sm:$0xff]  ;;  %v3375_v45 = vld [vmem:[#allocation70_spill] sm:$0xff]  ;;  %v3379_v7 = vld [vmem:[#allocation36_spill] sm:$0xff] }
  0xe5   : > { %1033 = vadd.xlane.f32.xlu0 %v1032_v43  ;;  %1001 = vst [vmem:[%s2648_s8 + $0x58] sm:$0x11] %v1000_v27  ;;  %v744_v51 = vsub.f32 %v2704_v9, %v3370_v42  ;;  %v745_v14 = vsub.f32 %v2706_v30, %v3371_v32  ;;  %v746_v33 = vsub.f32 %v2711_v17, %v3372_v55  ;;  %v1090_v5 = vsel %vm470_vm0, %v2782_v52, 0.0  ;;  %v3376_v43 = vld [vmem:[#allocation33_spill] sm:$0xff]  ;;  %v3377_v20 = vld [vmem:[#allocation34_spill] sm:$0xff]  ;;  %v3378_v27 = vld [vmem:[#allocation35_spill] sm:$0xff] }
  0xe6   : > { %v1085_v8 = vadd.f32 %v1084_v40, %v1083_v57  ;;  %v747_v13 = vsub.f32 %v2713_v59, %v3373_v36  ;;  %v1092_v54 = vsel %vm470_vm0, %v2785_v34, 0.0  ;;  %v1010_v11 = vmul.f32 %v2101_v29, %v742_v4  ;;  %v3380_v29 = vld [vmem:[#allocation71_spill] sm:$0xff]  ;;  %v3381_v4 = vld [vmem:[#allocation72_spill] sm:$0xff]  ;;  %s1668_s8 = scalar_lea.vmem %s1667_s18, 3072 }
  0xe7   : > { %v1011_v53 = vmul.f32 %v2105_v41, %v743_v48  ;;  %v748_v28 = vsub.f32 %v2715_v46, %v3374_v2  ;;  %v749_v1 = vsub.f32 %v2718_v44, %v3375_v45  ;;  %v1012_v26 = vmul.f32 %v3376_v43, %v744_v51  ;;  %v3382_v48 = vld [vmem:[#allocation73_spill] sm:$0xff]  ;;  %v3383_v2 = vld [vmem:[#allocation74_spill] sm:$0xff]  ;;  %v3385_v45 = vld [vmem:[#allocation76_spill] sm:$0xff]  ;;  %p1670_p11 = scmp.lt.s32.totalorder %s1668_s8, %s1662_s4 }
  0xe8   : > { %v1087_v37 = vadd.f32 %v1086_v58, %v1085_v8  ;;  %v1013_v40 = vmul.f32 %v3377_v20, %v745_v14  ;;  %v1014_v57 = vmul.f32 %v3378_v27, %v746_v33  ;;  %v1015_v42 = vmul.f32 %v3379_v7, %v747_v13  ;;  %v3384_v14 = vld [vmem:[#allocation75_spill] sm:$0xff]  ;;  %v3388_v20 = vld [vmem:[#allocation37_spill] sm:$0xff] }
  0xe9   : > { %v1035_v32 = vadd.f32 %v1011_v53, %v1010_v11  ;;  %v750_v41 = vsub.f32 %v2698_v12, %v3380_v29  ;;  %v751_v58 = vsub.f32 %v2702_v23, %v3381_v4  ;;  %v752_v8 = vsub.f32 %v2704_v9, %v3382_v48  ;;  %v3386_v11 = vld [vmem:[#allocation77_spill] sm:$0xff]  ;;  %v3387_v53 = vld [vmem:[#allocation78_spill] sm:$0xff]  ;;  %v3393_v48 = vld [vmem:[#allocation12_spill] sm:$0xff]  ;;  %p1671_p13 = por %p1670_p11, %p1669_p9 }
  0xea   : > { %v1089_v55 = vadd.f32 %v1088_v0, %v1087_v37  ;;  %v753_v51 = vsub.f32 %v2706_v30, %v3383_v2  ;;  %v754_v33 = vsub.f32 %v2711_v17, %v3384_v14  ;;  %v755_v13 = vsub.f32 %v2713_v59, %v3385_v45 }
  0xeb   : > { %v1036_v36 = vadd.f32 %v1035_v32, %v1012_v26  ;;  %v756_v12 = vsub.f32 %v2715_v46, %v3386_v11  ;;  %v757_v23 = vsub.f32 %v2718_v44, %v3387_v53  ;;  %v1018_v37 = vmul.f32 %v3354_v35, %v750_v41  ;;  %v3392_v41 = vld [vmem:[#allocation11_spill] sm:$0xff]  ;;  %v3400_v53 = vld [vmem:[#allocation13_spill] sm:$0xff]  ;;  %p1672_p0 = pnand %p1671_p13, %p1665_p8 }
  0xec   : > { %v1091_v0 = vadd.f32 %v1090_v5, %v1089_v55  ;;  %v1019_v43 = vmul.f32 %v3357_v38, %v751_v58  ;;  %v1020_v30 = vmul.f32 %v3358_v39, %v752_v8  ;;  %v1021_v26 = vmul.f32 %v3359_v63, %v753_v51  ;;  %v3391_v55 = vld [vmem:[#allocation10_spill] sm:$0xff]  ;;  %v3395_v51 = vld [vmem:[#allocation25_spill] sm:$0xff] }
  0xed   : > { %v1037_v9 = vadd.f32 %v1036_v36, %v1013_v40  ;;  %v1016_v27 = vmul.f32 %v3388_v20, %v748_v28  ;;  %v1022_v59 = vmul.f32 %v3360_v16, %v754_v33  ;;  %v1023_v46 = vmul.f32 %v3363_v3, %v755_v13  ;;  %v3389_v40 = vld [vmem:[#allocation38_spill] sm:$0xff]  ;;  %v3390_v3 = vld [vmem:[#allocation9_spill] sm:$0xff]  ;;  %v3399_v13 = vld [vmem:[#allocation27_spill] sm:$0xff] }
  0xee   : > { %v1093_v17 = vadd.f32 %v1092_v54, %v1091_v0  ;;  %v1044_v7 = vsel %vm470_vm0, %v1018_v37, 0.0  ;;  %v1045_v44 = vsel %vm470_vm0, %v1019_v43, 0.0  ;;  %v1024_v35 = vmul.f32 %v3364_v15, %v756_v12  ;;  %v3397_v33 = vld [vmem:[#allocation26_spill] sm:$0xff]  ;;  %v3402_v43 = vld [vmem:[#allocation15_spill] sm:$0xff] }
  0xef   : > { %v1038_v5 = vadd.f32 %v1037_v9, %v1014_v57  ;;  %v1046_v38 = vadd.f32 %v1045_v44, %v1044_v7  ;;  %v1047_v39 = vsel %vm470_vm0, %v1020_v30, 0.0  ;;  %v1017_v63 = vmul.f32 %v3389_v40, %v749_v1  ;;  %v3406_v44 = vld [vmem:[#allocation40_spill] sm:$0xff] }
  0xf0   : > { %1094 = vadd.xlane.f32.xlu1 %v1093_v17  ;;  %v1025_v28 = vmul.f32 %v3365_v56, %v757_v23  ;;  %v1049_v16 = vsel %vm470_vm0, %v1021_v26, 0.0  ;;  %v1131_v32 = vmul.f32 %v3390_v3, %v2570_v6  ;;  %v1132_v29 = vmul.f32 %v3391_v55, %v2582_v22  ;;  %v3394_v6 = vld [vmem:[#allocation86_spill] sm:$0xff]  ;;  %v3396_v22 = vld [vmem:[#allocation87_spill] sm:$0xff]  ;;  %v3403_v26 = vld [vmem:[#allocation89_spill] sm:$0xff] }
  0xf1   : > { %v1039_v54 = vadd.f32 %v1038_v5, %v1015_v42  ;;  %v1048_v57 = vadd.f32 %v1047_v39, %v1046_v38  ;;  %v1133_v15 = vmul.f32 %v3392_v41, %v2654_v31  ;;  %v1051_v58 = vsel %vm470_vm0, %v1022_v59, 0.0  ;;  %v3398_v31 = vld [vmem:[#allocation88_spill] sm:$0xff]  ;;  %v3408_v38 = vld [vmem:[#allocation29_spill] sm:$0xff] }
  0xf2   : > { %v1053_v1 = vsel %vm470_vm0, %v1023_v46, 0.0  ;;  %v1055_v56 = vsel %vm470_vm0, %v1024_v35, 0.0  ;;  %v1134_v8 = vmul.f32 %v3393_v48, %v2657_v49  ;;  %v1155_v36 = vadd.f32 %v1132_v29, %v1131_v32  ;;  %v3401_v49 = vld [vmem:[#allocation14_spill] sm:$0xff]  ;;  %v3404_v17 = vld [vmem:[#allocation28_spill] sm:$0xff]  ;;  %v3405_v46 = vld [vmem:[#allocation39_spill] sm:$0xff] }
  0xf3   : > { %v1040_v4 = vadd.f32 %v1039_v54, %v1016_v27  ;;  %v1050_v42 = vadd.f32 %v1049_v16, %v1048_v57  ;;  %v1139_v14 = vmul.f32 %v3395_v51, %v3394_v6  ;;  %v1140_v45 = vmul.f32 %v3397_v33, %v3396_v22  ;;  %v3407_v35 = vld [vmem:[#allocation90_spill] sm:$0xff]  ;;  %v3411_v16 = vld [vmem:[#allocation16_spill] sm:$0xff]  ;;  %v3412_v32 = vld [vmem:[#allocation91_spill] sm:$0xff] }
  0xf4   : > { %v1141_v0 = vmul.f32 %v3399_v13, %v3398_v31  ;;  %v1057_v12 = vsel %vm470_vm0, %v1025_v28, 0.0  ;;  %v1135_v23 = vmul.f32 %v3400_v53, %v2664_v47  ;;  %v1156_v37 = vadd.f32 %v1155_v36, %v1133_v15  ;;  %v3418_v51 = vld [vmem:[#allocation32_spill] sm:$0xff]  ;;  %v3419_v33 = vld [vmem:[#allocation45_spill] sm:$0xff] }
  0xf5   : > { %v1041_v2 = vadd.f32 %v1040_v4, %v1017_v63  ;;  %v1052_v11 = vadd.f32 %v1051_v58, %v1050_v42  ;;  %v1136_v9 = vmul.f32 %v3401_v49, %v2667_v62  ;;  %v1137_v30 = vmul.f32 %v3402_v43, %v2670_v10  ;;  %v3409_v62 = vld [vmem:[#allocation41_spill] sm:$0xff]  ;;  %v3410_v10 = vld [vmem:[#allocation42_spill] sm:$0xff]  ;;  %v3415_v42 = vld [vmem:[#allocation92_spill] sm:$0xff] }
  0xf6   : > { %v1142_v20 = vmul.f32 %v3404_v17, %v3403_v26  ;;  %v1164_v27 = vadd.f32 %v1140_v45, %v1139_v14  ;;  %v1157_v5 = vadd.f32 %v1156_v37, %v1134_v8  ;;  %v1147_v7 = vmul.f32 %v3405_v46, %v2763_v19  ;;  %v3413_v19 = vld [vmem:[#allocation30_spill] sm:$0xff]  ;;  %v3417_v8 = vld [vmem:[#allocation44_spill] sm:$0xff] }
  0xf7   : > { %1042 = vadd.xlane.f32.xlu0 %v1041_v2  ;;  %v1054_v59 = vadd.f32 %v1053_v1, %v1052_v11  ;;  %v1148_v47 = vmul.f32 %v3406_v44, %v2767_v24  ;;  %v1143_v39 = vmul.f32 %v3408_v38, %v3407_v35  ;;  %v1149_v63 = vmul.f32 %v3409_v62, %v2770_v50  ;;  %v3414_v24 = vld [vmem:[#allocation43_spill] sm:$0xff] }
  0xf8   : > { %v1165_v40 = vadd.f32 %v1164_v27, %v1141_v0  ;;  %v1150_v54 = vmul.f32 %v3410_v10, %v2773_v18  ;;  %v1138_v57 = vmul.f32 %v3411_v16, %v2673_v60  ;;  %v1158_v3 = vadd.f32 %v1157_v5, %v1135_v23 }
  0xf9   : > { %v1056_v28 = vadd.f32 %v1055_v56, %v1054_v59  ;;  %v1144_v55 = vmul.f32 %v3413_v19, %v3412_v32  ;;  %v1151_v41 = vmul.f32 %v3414_v24, %v2776_v21  ;;  %v1173_v15 = vsel %vm470_vm0, %v1147_v7, 0.0  ;;  %v3416_v56 = vld [vmem:[#allocation31_spill] sm:$0xff] }
  0xfa   : > { %v1166_v29 = vadd.f32 %v1165_v40, %v1142_v20  ;;  %v1174_v4 = vsel %vm470_vm0, %v1148_v47, 0.0  ;;  %v1159_v58 = vadd.f32 %v1158_v3, %v1136_v9  ;;  %v1176_v18 = vsel %vm470_vm0, %v1149_v63, 0.0 }
  0xfb   : > { %v1058_v50 = vadd.f32 %v1057_v12, %v1056_v28  ;;  %v1175_v1 = vadd.f32 %v1174_v4, %v1173_v15  ;;  %v1145_v60 = vmul.f32 %v3416_v56, %v3415_v42  ;;  %v1152_v36 = vmul.f32 %v3417_v8, %v2779_v61  ;;  %v3420_v61 = vld [vmem:[#allocation46_spill] sm:$0xff] }
  0xfc   : > { %v1167_v48 = vadd.f32 %v1166_v29, %v1143_v39  ;;  %v1178_v2 = vsel %vm470_vm0, %v1150_v54, 0.0  ;;  %v1160_v21 = vadd.f32 %v1159_v58, %v1137_v30  ;;  %v1146_v14 = vmul.f32 %v3418_v51, %v2645_v25 }
  0xfd   : > { %1059 = vadd.xlane.f32.xlu1 %v1058_v50  ;;  %v1177_v6 = vadd.f32 %v1176_v18, %v1175_v1  ;;  %v1153_v45 = vmul.f32 %v3419_v33, %v2782_v52  ;;  %v1180_v31 = vsel %vm470_vm0, %v1151_v41, 0.0  ;;  %v1154_v12 = vmul.f32 %v3420_v61, %v2785_v34 }
  0xfe   : > { %v1168_v22 = vadd.f32 %v1167_v48, %v1144_v55  ;;  %v1161_v13 = vadd.f32 %v1160_v21, %v1138_v57  ;;  %v1182_v53 = vsel %vm470_vm0, %v1152_v36, 0.0  ;;  %v3421_v43 = vmov 0.0  }
  0xff   : > { %v1179_v0 = vadd.f32 %v1178_v2, %v1177_v6  ;;  %v1184_v25 = vsel %vm470_vm0, %v1153_v45, 0.0  ;;  %v1186_v52 = vsel %vm470_vm0, %v1154_v12, 0.0  ;;  %317 = vst.msk [vmem:[%s2973_s15] sm:$0xff] %vm316_vm2, %v3421_v43  ;;  %318 = vst.msk [vmem:[%s2973_s15 + $0x8] sm:$0xff] %vm316_vm2, %v3421_v43  ;;  %vm319_vm0 = vcmask 32768  }
 0x100   : > { %v1169_v11 = vadd.f32 %v1168_v22, %v1145_v60  ;;  %1162 = vadd.xlane.f32.xlu0 %v1161_v13  ;;  %320 = vst.msk [vmem:[%s2973_s15 + $0x10] sm:$0x1] %vm319_vm0, %v3421_v43 }
 0x101   : > { %v1181_v23 = vadd.f32 %v1180_v31, %v1179_v0 }
 0x102   : > { %v1170_v37 = vadd.f32 %v1169_v11, %v1146_v14 }
 0x103   : > { %v1183_v49 = vadd.f32 %v1182_v53, %v1181_v23 }
 0x104   : > { %1171 = vadd.xlane.f32.xlu1 %v1170_v37 }
 0x105   : > { %v1185_v9 = vadd.f32 %v1184_v25, %v1183_v49 }
 0x107   : > { %v1187_v34 = vadd.f32 %v1186_v52, %v1185_v9 }
 0x109   : > { %1188 = vadd.xlane.f32.xlu0 %v1187_v34 }
 0x10a   : > { %1675 = shalt.err (!%p1672_p0)
}
 0x10b   : > { %s1676_s6 = scalar_lea.hbm %s2990_s27, 1536  ;;  %s1680_s23 = scalar_lea.hbm %s3081_s2, 6144 }
 0x10c   : > { %p1677_p1 = scmp.ne.s32.totalorder %s2990_s27, %s1676_s6  ;;  %p1681_p4 = scmp.lt.s32.totalorder %s2990_s27, %s3081_s2 }
 0x10d   : > { %p1682_p5 = scmp.lt.s32.totalorder %s1680_s23, %s1676_s6 }
 0x10e   : > { %p1678_p2 = pnand %p1677_p1, %p1883_p10 }
 0x10f   : > { %p1683_p6 = por %p1682_p5, %p1681_p4 }
 0x110   : > { %p1679_p3 = pneg %p1678_p2 }
 0x112   : > { %p1684_p7 = pnand %p1683_p6, %p1679_p3 }
 0x114   : > { %1687 = shalt.err (!%p1684_p7)
}
 0x115   : > { %s1774_s26 = smov 512   ;;  %s1775_s4 = smov 2048   ;;  %v1104_v30 = vpop.xlane.xlu0 %1103  ;;  %v1206_v26 = vpop.xlane.xlu1 %1205  ;;  %v3422_v46 = vlaneseq  ;;  %v3423_v63 = vld [vmem:[#allocation7_spill] sm:$0xff]  ;;  %v1234_v29 = vld [vmem:[%s2973_s15 + $0x8] sm:$0xff]  ;;  %v1235_v58 = vld [vmem:[%s2973_s15 + $0x10] sm:$0x1] }
 0x116   : > { %s1776_s17 = smov 32   ;;  %v1229_v10 = vrot.slane %v1206_v26, %v3423_v63  ;;  %v1233_v54 = vld [vmem:[%s2973_s15] sm:$0xff] }
 0x117   : > { %1491 = dma.vmem_to_hbm [thread:$0]  (%p1883_p10), %s2992_s28, 1536, %s2990_s27, %s2996_s30, %s1774_s26, %s1775_s4, %s1776_s17   ;;  %v1208_v7 = vand.u32 127, %v3422_v46 }
 0x119   : > { %v1130_v17 = vpop.xlane.xlu0 %1129  ;;  %v1113_v20 = vpop.xlane.xlu1 %1112  ;;  %vm1209_vm3 = vcmp.eq.s32.totalorder %v1208_v7, 0  ;;  %vm1213_vm4 = vcmp.eq.s32.totalorder %v1208_v7, 1  ;;  %vm1217_vm5 = vcmp.eq.s32.totalorder %v1208_v7, 2  ;;  %vm1221_vm6 = vcmp.eq.s32.totalorder %v1208_v7, 3 }
 0x11a   : > { %vm1225_vm7 = vcmp.eq.s32.totalorder %v1208_v7, 4 }
 0x156   : > { %v1078_v27 = vpop.xlane.xlu0 %1077 }
 0x163   : > { %v1069_v59 = vpop.xlane.xlu1 %1068 }
 0x16e   : > { %v1034_v5 = vpop.xlane.xlu0 %1033 }
 0x16f   : > { %v1210_v35 = vsel %vm1209_vm3, %v1034_v5, 0.0 }
 0x170   : > { %v1214_v39 = vsel %vm1213_vm4, %v1069_v59, %v1210_v35 }
 0x171   : > { %v1218_v16 = vsel %vm1217_vm5, %v1104_v30, %v1214_v39 }
 0x179   : > { %v1095_v44 = vpop.xlane.xlu1 %1094 }
 0x180   : > { %v1043_v47 = vpop.xlane.xlu0 %1042 }
 0x181   : > { %v1211_v38 = vsel %vm1209_vm3, %v1043_v47, 0.0 }
 0x182   : > { %v1215_v62 = vsel %vm1213_vm4, %v1078_v27, %v1211_v38 }
 0x183   : > { %v1219_v3 = vsel %vm1217_vm5, %v1113_v20, %v1215_v62 }
 0x186   : > { %v1060_v40 = vpop.xlane.xlu1 %1059 }
 0x187   : > { %v1212_v32 = vsel %vm1209_vm3, %v1060_v40, 0.0 }
 0x188   : > { %v1216_v15 = vsel %vm1213_vm4, %v1095_v44, %v1212_v32 }
 0x189   : > { %v1163_v28 = vpop.xlane.xlu0 %1162  ;;  %v1220_v18 = vsel %vm1217_vm5, %v1130_v17, %v1216_v15 }
 0x18a   : > { %v1222_v57 = vsel %vm1221_vm6, %v1163_v28, %v1218_v16 }
 0x18b   : > { %v1230_v19 = vsel %vm1225_vm7, %v1229_v10, %v1222_v57 }
 0x18c   : > { %v1236_v55 = vadd.f32 %v1233_v54, %v1230_v19 }
 0x18d   : > { %v1172_v24 = vpop.xlane.xlu1 %1171 }
 0x18e   : > { %v1223_v41 = vsel %vm1221_vm6, %v1172_v24, %v1219_v3  ;;  %1240 = vst.msk [vmem:[%s2973_s15] sm:$0xff] %vm316_vm2, %v1236_v55 }
 0x18f   : > { %v1231_v4 = vsel %vm1225_vm7, %v1229_v10, %v1223_v41 }
 0x190   : > { %v1237_v50 = vadd.f32 %v1234_v29, %v1231_v4 }
 0x192   : > { %1241 = vst.msk [vmem:[%s2973_s15 + $0x8] sm:$0xff] %vm316_vm2, %v1237_v50  ;;  %v1189_v1 = vpop.xlane.xlu0 %1188 }
 0x193   : > { %v1224_v42 = vsel %vm1221_vm6, %v1189_v1, %v1220_v18 }
 0x194   : > { %v1232_v56 = vsel %vm1225_vm7, %v1229_v10, %v1224_v42 }
 0x195   : > { %v1238_v60 = vadd.f32 %v1235_v58, %v1232_v56 }
 0x197   : > { %1243 = vst.msk [vmem:[%s2973_s15 + $0x10] sm:$0x1] %vm319_vm0, %v1238_v60 }
 0x198 PF: > { %p1497_p10 = scmp.ge.s32.totalorder %s1770_s21, 2  ;;  %s1288_s29 = sand.u32 1, %s1734_s12  }
 0x199   : > { %s1289_s28 = scalar_lea.sflag [#allocation4], %s1288_s29 }
 0x19a   : > { %p1494_p8 = pnand %p1497_p10, %p1887_p12 }
 0x19c   : > { %p1495_p9 = pneg %p1494_p8 }
 0x19e   : > { %1729 = dma.done.wait (%p1495_p9), %s1289_s28, 1536  }
 0x19f   : > { %1731 = vsyncadd (%p1495_p9), %s1289_s28, 4294965760  ;;  %s17_s21 = sadd.s32 1, %s1770_s21   ;;  %s3424_s27 = sld [smem:[#allocation6_spill]] }
 0x1a0   : > { %p14_p11 = scmp.ge.s32.totalorder %s17_s21, 6   ;;  %s3425_s12 = smov %s1738_s13 }
 0x1a1   : > { %s3426_s13 = smov %s1742_s14  ;;  %s3427_s14 = smov %s1881_s11 }
 0x1a2   : > { %s3428_s15 = smov %s1750_s16  ;;  %s3429_s16 = smov %s1878_s10 }
 0x1a3   : > { %s3430_s17 = smov %s1762_s19  ;;  %s3431_s18 = smov %s1766_s20 }
 0x1a4   : > { %s3433_s20 = smov %s3439_s25  ;;  %16 = sbr.rel (!%p14_p11) target bundleno = 6 (0x6), region = 110 }
 0x1a5   : > { %s3432_s19 = smov %s3424_s27 }
 0x1a9   :  { %1306 = vsyncpa [#allocation4], 1 }
 0x1aa   :  { %1308 = vsyncpa [#allocation4 + $0x1], 1 }

</bundles_post_ra>
